<compile_context>
chip_gen: v5e
topology: v5e:2x2
jax: 0.10.0
libtpu: 0.0.40
codegen_flags: <defaults>
</compile_context>

<pallas_src>
import jax
import jax.numpy as jnp
from jax.experimental import pallas as pl
from jax.experimental.pallas import tpu as pltpu


# ----------------------------------------------------------------------------
# Kernels (gridless, whole arrays resident in VMEM)
# ----------------------------------------------------------------------------

def _sigmoid_mul_nchw_kernel(gate_ref, x_ref, o_ref):
    # gate_ref: (NC, 1)   x_ref: (NC, HW)   o_ref: (NC, HW)
    # Sigmoid on the tiny gate in f32 (EUP); multiply in promoted precision,
    # single cast at the store.
    g = jax.nn.sigmoid(gate_ref[...].astype(jnp.float32))
    o_ref[...] = (x_ref[...] * g).astype(o_ref.dtype)


def _sigmoid_mul_nhwc_kernel(gate_ref, x_ref, o_ref):
    # gate_ref: (N, 1, C)   x_ref: (N, HW, C)   o_ref: (N, HW, C)
    # Lane-dense layout: gate broadcast is a cheap stride-0 sublane broadcast.
    g = jax.nn.sigmoid(gate_ref[...].astype(jnp.float32))
    o_ref[...] = (x_ref[...] * g).astype(o_ref.dtype)


# ----------------------------------------------------------------------------
# Wrappers
# ----------------------------------------------------------------------------

def _cost_estimate(n, c, h, w, x_dtype, g_dtype):
    x_bytes = jnp.dtype(x_dtype).itemsize
    g_bytes = jnp.dtype(g_dtype).itemsize
    return pl.CostEstimate(
        flops=n * c * h * w,                 # one multiply per output element
        transcendentals=n * c,               # sigmoid on the gate
        bytes_accessed=2 * n * c * h * w * x_bytes + n * c * g_bytes,
    )


def sigmoid_mul(x127, x123, *, donate_input=False):
    """x129 = x123 * sigmoid(x127), NCHW layout (matches the PyTorch module).

    x127: (N, C, 1, 1) gate, x123: (N, C, H, W) feature map -> (N, C, H, W).

    donate_input=True aliases the feature-map buffer to the output
    (input_output_aliases={1: 0}).  This only saves the 376 KB output
    allocation/writeback when this wrapper runs under jax.jit with x123
    actually donated (donate_argnums); outside jit it is merely ineffective.
    If the caller donates, x123 must not be reused after this call.
    """
    n, c, h, w = x123.shape
    assert x127.shape == (n, c, 1, 1)

    x2d = x123.reshape(n * c, h * w)   # (NC, HW) — HW on the lane axis
    g2d = x127.reshape(n * c, 1)       # (NC, 1)  — broadcasts along lanes

    extra = {}
    if donate_input:
        extra["input_output_aliases"] = {1: 0}

    out2d = pl.pallas_call(
        _sigmoid_mul_nchw_kernel,
        out_shape=jax.ShapeDtypeStruct((n * c, h * w), x123.dtype),
        # Gridless single block: whole arrays live in VMEM, no pipelining.
        in_specs=[
            pl.BlockSpec(memory_space=pltpu.MemorySpace.VMEM),
            pl.BlockSpec(memory_space=pltpu.MemorySpace.VMEM),
        ],
        out_specs=pl.BlockSpec(memory_space=pltpu.MemorySpace.VMEM),
        cost_estimate=_cost_estimate(n, c, h, w, x123.dtype, x127.dtype),
        **extra,
    )(g2d, x2d)

    return out2d.reshape(n, c, h, w)


def sigmoid_mul_nhwc(gate, x, *, donate_input=False):
    """Lane-dense variant for models whose native layout is NHWC.

    gate: (N, 1, 1, C), x: (N, H, W, C) -> (N, H, W, C).
    Use this ONLY when NHWC is already the model's layout — a wrapper-side
    transpose would cost a full extra HBM pass and negate the benefit.
    """
    n, h, w, c = x.shape
    assert gate.shape == (n, 1, 1, c)

    x3d = x.reshape(n, h * w, c)      # C on the lane axis (dense 480->512 pad)
    g3d = gate.reshape(n, 1, c)       # dense gate row, sublane broadcast

    extra = {}
    if donate_input:
        extra["input_output_aliases"] = {1: 0}

    out3d = pl.pallas_call(
        _sigmoid_mul_nhwc_kernel,
        out_shape=jax.ShapeDtypeStruct((n, h * w, c), x.dtype),
        in_specs=[
            pl.BlockSpec(memory_space=pltpu.MemorySpace.VMEM),
            pl.BlockSpec(memory_space=pltpu.MemorySpace.VMEM),
        ],
        out_specs=pl.BlockSpec(memory_space=pltpu.MemorySpace.VMEM),
        cost_estimate=_cost_estimate(n, c, h, w, x.dtype, gate.dtype),
        **extra,
    )(g3d, x3d)

    return out3d.reshape(n, h, w, c)


# ----------------------------------------------------------------------------
# Harness
# ----------------------------------------------------------------------------

if __name__ == "__main__":
    key = jax.random.PRNGKey(0)
    k1, k2 = jax.random.split(key)

    # Shapes straight from the module's forward (already small).
    x123 = jax.random.normal(k1, (1, 480, 14, 14), dtype=jnp.float32)
    x127 = jax.random.normal(k2, (1, 480, 1, 1), dtype=jnp.float32)

    # Reference in plain JAX.
    ref = x123 * jax.nn.sigmoid(x127)

    # Primary path: NCHW, exactly the module's semantics (no donation claimed
    # outside jit — see sigmoid_mul docstring).
    out = sigmoid_mul(x127, x123)
    jax.block_until_ready(out)
    assert out.shape == (1, 480, 14, 14)
    assert jnp.allclose(out, ref, atol=1e-6, rtol=1e-6)

    # Lane-dense NHWC variant (for callers whose native layout is NHWC).
    x_nhwc = jnp.transpose(x123, (0, 2, 3, 1))        # harness-only relayout
    g_nhwc = jnp.transpose(x127, (0, 2, 3, 1))
    out_nhwc = sigmoid_mul_nhwc(g_nhwc, x_nhwc)
    jax.block_until_ready(out_nhwc)
    ref_nhwc = jnp.transpose(ref, (0, 2, 3, 1))
    assert jnp.allclose(out_nhwc, ref_nhwc, atol=1e-6, rtol=1e-6)

    print("KERNEL_OK")
</pallas_src>

<mosaic_0001>
module attributes {stable_mosaic.version = 11 : i64} {
  func.func @_sigmoid_mul_nchw_kernel(%arg0: memref<480x1xf32, #tpu.memory_space<vmem>>, %arg1: memref<480x196xf32, #tpu.memory_space<vmem>>, %arg2: memref<480x196xf32, #tpu.memory_space<vmem>>) attributes {dimension_semantics = [], scalar_prefetch = 0 : i64, scratch_operands = 0 : i64, tpu.core_type = #tpu.core_type<tc>} {
    %c0 = arith.constant 0 : index
    %c0_0 = arith.constant 0 : index
    %0 = vector.load %arg0[%c0, %c0_0] : memref<480x1xf32, #tpu.memory_space<vmem>>, vector<480x1xf32>
    %1 = arith.negf %0 : vector<480x1xf32>
    %2 = math.exp %1 : vector<480x1xf32>
    %cst = arith.constant 1.000000e+00 : f32
    %3 = vector.broadcast %cst : f32 to vector<480x1xf32>
    %4 = arith.addf %3, %2 : vector<480x1xf32>
    %5 = arith.divf %3, %4 : vector<480x1xf32>
    %c0_1 = arith.constant 0 : index
    %c0_2 = arith.constant 0 : index
    %6 = vector.load %arg1[%c0_1, %c0_2] : memref<480x196xf32, #tpu.memory_space<vmem>>, vector<480x196xf32>
    %7 = vector.broadcast %5 : vector<480x1xf32> to vector<480x196xf32>
    %8 = arith.mulf %6, %7 : vector<480x196xf32>
    %c0_3 = arith.constant 0 : index
    %c0_4 = arith.constant 0 : index
    %9 = vector.load %arg2[%c0_3, %c0_4] : memref<480x196xf32, #tpu.memory_space<vmem>>, vector<480x196xf32>
    tpu.vector_store %arg2[%c0_3, %c0_4], %8 {strides = array<i32>} : memref<480x196xf32, #tpu.memory_space<vmem>>, vector<480x196xf32>,
    return
  }
}

</mosaic_0001>

<bundles_post_ra>
// kernel: tpu_custom_call.1
= control target key start
LH: loop header
LB: loop body
LE: loop exit
PB: predicated region body
PF: predicated region fallthrough
CT: control target
= control target key end

     0   :  { %v2180_v0 = vmov 0   ;;  %s4626_s0 = inlined_call_operand.vmem [shape: f32[480,1], index: 0, kind: input, shape index: {}]   ;;  %s4627_s1 = inlined_call_operand.vmem [shape: f32[480,196], index: 1, kind: input, shape index: {}]   ;;  %s4628_s2 = inlined_call_operand.vmem [shape: f32[480,196], index: 2, kind: output, shape index: {}]  }
   0x1   :  { %1939 = vset.pattern.permute.xlu2 %v2180_v0  ;;  %1938 = vset.pattern.permute.xlu1 %v2180_v0  ;;  %v15_v1 = vld [vmem:[%s4626_s0 + $0x20] sm:$0xff]  ;;  %v13_v2 = vld [vmem:[%s4626_s0 + $0x10] sm:$0xff]  ;;  %v16_v7 = vld [vmem:[%s4626_s0 + $0x28] sm:$0xff] }
   0x2   :  { %v11_v3 = vld [vmem:[%s4626_s0] sm:$0xff]  ;;  %1937 = vset.pattern.permute.xlu0 %v2180_v0  ;;  %v1880_v4 = vmul.f32 -1.442695, %v15_v1  ;;  %v1878_v5 = vmul.f32 -1.442695, %v13_v2  ;;  %v14_v8 = vld [vmem:[%s4626_s0 + $0x18] sm:$0xff] }
   0x3   :  { %v1876_v6 = vmul.f32 -1.442695, %v11_v3  ;;  %v12_v9 = vld [vmem:[%s4626_s0 + $0x8] sm:$0xff]  ;;  %v1881_v10 = vmul.f32 -1.442695, %v16_v7  ;;  %v19_v13 = vld [vmem:[%s4626_s0 + $0x40] sm:$0xff] }
   0x4   :  { %1940 = vpow2.f32 %v1880_v4  ;;  %v1879_v11 = vmul.f32 -1.442695, %v14_v8  ;;  %v1877_v12 = vmul.f32 -1.442695, %v12_v9  ;;  %v18_v14 = vld [vmem:[%s4626_s0 + $0x38] sm:$0xff]  ;;  %v17_v17 = vld [vmem:[%s4626_s0 + $0x30] sm:$0xff] }
   0x5   :  { %1942 = vpow2.f32 %v1878_v5  ;;  %v1884_v15 = vmul.f32 -1.442695, %v19_v13  ;;  %v1883_v16 = vmul.f32 -1.442695, %v18_v14  ;;  %v1882_v23 = vmul.f32 -1.442695, %v17_v17 }
   0x6   :  { %1944 = vpow2.f32 %v1876_v6  ;;  %v22_v25 = vld [vmem:[%s4626_s0 + $0x58] sm:$0xff]  ;;  %v20_v39 = vld [vmem:[%s4626_s0 + $0x48] sm:$0xff] }
   0x7   :  { %1946 = vpow2.f32 %v1881_v10  ;;  %v2242_v35 = vmul.f32 -1.442695, %v22_v25 }
   0x8   :  { %1948 = vpow2.f32 %v1879_v11 }
   0x9   :  { %1950 = vpow2.f32 %v1877_v12 }
   0xa   :  { %v1941_v18 = vpop.eup %1940  ;;  %1952 = vpow2.f32 %v1884_v15 }
   0xb   :  { %v1943_v19 = vpop.eup %1942  ;;  %v2223_v20 = vadd.f32 1.0, %v1941_v18  ;;  %1954 = vpow2.f32 %v1883_v16 }
   0xc   :  { %v1945_v21 = vpop.eup %1944  ;;  %v2225_v22 = vadd.f32 1.0, %v1943_v19 }
   0xd   :  { %v1947_v24 = vpop.eup %1946  ;;  %1956 = vrcp.f32 %v2223_v20  ;;  %v380_v27 = vand.u32 2147483647, %v2223_v20  ;;  %v382_v28 = vand.u32 2147483648, %v2223_v20  ;;  %v2236_v32 = vadd.f32 1.0, %v1945_v21 }
   0xe   :  { %v1949_v26 = vpop.eup %1948  ;;  %1958 = vrcp.f32 %v2225_v22  ;;  %v350_v30 = vand.u32 2147483647, %v2225_v22  ;;  %v352_v31 = vand.u32 2147483648, %v2225_v22  ;;  %v2238_v33 = vadd.f32 1.0, %v1947_v24 }
   0xf   :  { %v1951_v29 = vpop.eup %1950  ;;  %v2240_v34 = vadd.f32 1.0, %v1949_v26  ;;  %1960 = vpow2.f32 %v1882_v23  ;;  %vm376_vm0 = vweird.f32 %v2223_v20  ;;  %vm346_vm1 = vweird.f32 %v2225_v22 }
  0x10   :  { %v1953_v36 = vpop.eup %1952  ;;  %1962 = vrcp.f32 %v2236_v32  ;;  %v322_v37 = vand.u32 2147483648, %v2236_v32  ;;  %vm2248_vm2 = vcmp.eq.f32.partialorder %v380_v27, 8.507059e+37  ;;  %v383_v40 = vor.u32 1.1754944e-38, %v382_v28 }
  0x11   :  { %v1955_v38 = vpop.eup %1954  ;;  %v320_v41 = vand.u32 2147483647, %v2236_v32  ;;  %1964 = vrcp.f32 %v2238_v33  ;;  %v2254_v42 = vadd.f32 1.0, %v1951_v29  ;;  %vm2256_vm3 = vcmp.eq.f32.partialorder %v350_v30, 8.507059e+37 }
  0x12   :  { %v353_v45 = vor.u32 1.1754944e-38, %v352_v31  ;;  %v397_v46 = vand.u32 2147483648, %v2238_v33  ;;  %1966 = vrcp.f32 %v2240_v34  ;;  %vm316_vm4 = vweird.f32 %v2236_v32 }
  0x13   :  { %v1957_v43 = vpop.eup %1956  ;;  %vm391_vm5 = vweird.f32 %v2238_v33  ;;  %v395_v49 = vand.u32 2147483647, %v2238_v33  ;;  %v2267_v51 = vor.u32 1.1754944e-38, %v322_v37  ;;  %v365_v52 = vand.u32 2147483647, %v2240_v34 }
  0x14   :  { %v1959_v47 = vpop.eup %1958  ;;  %v372_v48 = vmul.f32 %v1957_v43, %v2223_v20  ;;  %v367_v53 = vand.u32 2147483648, %v2240_v34  ;;  %vm377_vm6 = vweird.f32 %v1957_v43  ;;  %vm2271_vm7 = vcmp.eq.f32.partialorder %v320_v41, 8.507059e+37 }
  0x15   :  { %v342_v50 = vmul.f32 %v1959_v47, %v2225_v22  ;;  %v1961_v54 = vpop.eup %1960  ;;  %vm361_vm8 = vweird.f32 %v2240_v34  ;;  %1968 = vrcp.f32 %v2254_v42  ;;  %vm347_vm9 = vweird.f32 %v1959_v47  ;;  %vm2287_vm12 = vmor %vm376_vm0, %vm377_vm6 }
  0x16   :  { %v373_v55 = vsub.f32 1.0, %v372_v48  ;;  %v1963_v57 = vpop.eup %1962  ;;  %v398_v59 = vor.u32 1.1754944e-38, %v397_v46  ;;  %vm331_vm10 = vweird.f32 %v2254_v42  ;;  %vm2279_vm11 = vcmp.eq.f32.partialorder %v395_v49, 8.507059e+37  ;;  %vm2300_vm15 = vmor %vm346_vm1, %vm347_vm9 }
  0x17   :  { %v343_v58 = vsub.f32 1.0, %v342_v50  ;;  %v1965_v60 = vpop.eup %1964  ;;  %v312_v62 = vmul.f32 %v1963_v57, %v2236_v32  ;;  %v368_v0 = vor.u32 1.1754944e-38, %v367_v53  ;;  %v335_v1 = vand.u32 2147483647, %v2254_v42 }
  0x18   :  { %v374_v61 = vmul.f32 %v1957_v43, %v373_v55  ;;  %v1967_v2 = vpop.eup %1966  ;;  %vm317_vm13 = vweird.f32 %v1963_v57  ;;  %v387_v5 = vmul.f32 %v1965_v60, %v2238_v33  ;;  %vm2292_vm14 = vcmp.eq.f32.partialorder %v365_v52, 8.507059e+37  ;;  %v21_v33 = vld [vmem:[%s4626_s0 + $0x50] sm:$0xff] }
  0x19   :  { %v344_v4 = vmul.f32 %v1959_v47, %v343_v58  ;;  %v337_v7 = vand.u32 2147483648, %v2254_v42  ;;  %v313_v10 = vsub.f32 1.0, %v312_v62  ;;  %vm392_vm0 = vweird.f32 %v1965_v60  ;;  %vm2318_vm1 = vmor %vm316_vm4, %vm317_vm13 }
  0x1a   :  { %v375_v8 = vadd.f32 %v1957_v43, %v374_v61  ;;  %v357_v11 = vmul.f32 %v1967_v2, %v2240_v34  ;;  %v388_v13 = vsub.f32 1.0, %v387_v5  ;;  %vm362_vm6 = vweird.f32 %v1967_v2  ;;  %v23_v61 = vld [vmem:[%s4626_s0 + $0x60] sm:$0xff] }
  0x1b   :  { %v345_v12 = vadd.f32 %v1959_v47, %v344_v4  ;;  %v2305_v14 = vadd.f32 1.0, %v1953_v36  ;;  %v1969_v15 = vpop.eup %1968  ;;  %v314_v17 = vmul.f32 %v1963_v57, %v313_v10  ;;  %v2309_v19 = vadd.f32 1.0, %v1955_v38  ;;  %vm2337_vm4 = vmor %vm361_vm8, %vm362_vm6 }
  0x1c   :  { %v379_v16 = vsel %vm2287_vm12, %v1957_v43, %v375_v8  ;;  %v358_v18 = vsub.f32 1.0, %v357_v11  ;;  %v389_v23 = vmul.f32 %v1965_v60, %v388_v13  ;;  %v327_v24 = vmul.f32 %v1969_v15, %v2254_v42  ;;  %v25_v42 = vld [vmem:[%s4626_s0 + $0x70] sm:$0xff] }
  0x1d   :  { %v384_v20 = vsel %vm2248_vm2, %v383_v40, %v379_v16  ;;  %v349_v21 = vsel %vm2300_vm15, %v1959_v47, %v345_v12  ;;  %v315_v26 = vadd.f32 %v1963_v57, %v314_v17  ;;  %vm2328_vm2 = vmor %vm391_vm5, %vm392_vm0  ;;  %v2332_v29 = vadd.f32 1.0, %v1961_v54 }
  0x1e   :  { %1353 = vperm.xlu2 %1939, %v384_v20   ;;  %v354_v25 = vsel %vm2256_vm3, %v353_v45, %v349_v21  ;;  %v359_v28 = vmul.f32 %v1967_v2, %v358_v18  ;;  %v390_v30 = vadd.f32 %v1965_v60, %v389_v23  ;;  %v328_v32 = vsub.f32 1.0, %v327_v24  ;;  %v26_v21 = vld [vmem:[%s4626_s0 + $0x78] sm:$0xff] }
  0x1f   :  { %1343 = vperm.xlu1 %1938, %v354_v25   ;;  %vm332_vm3 = vweird.f32 %v1969_v15  ;;  %1970 = vrcp.f32 %v2305_v14  ;;  %v319_v36 = vsel %vm2318_vm1, %v1963_v57, %v315_v26  ;;  %v440_v38 = vand.u32 2147483647, %v2305_v14 }
  0x20   :  { %v360_v37 = vadd.f32 %v1967_v2, %v359_v28  ;;  %v442_v34 = vand.u32 2147483648, %v2305_v14  ;;  %v324_v40 = vsel %vm2271_vm7, %v2267_v51, %v319_v36  ;;  %v394_v41 = vsel %vm2328_vm2, %v1965_v60, %v390_v30  ;;  %vm2362_vm5 = vmor %vm331_vm10, %vm332_vm3  ;;  %v24_v60 = vld [vmem:[%s4626_s0 + $0x68] sm:$0xff] }
  0x21   :  { %v329_v43 = vmul.f32 %v1969_v15, %v328_v32  ;;  %1972 = vrcp.f32 %v2309_v19  ;;  %1333 = vperm.xlu0 %1937, %v324_v40   ;;  %v1886_v46 = vmul.f32 -1.442695, %v21_v33  ;;  %v399_v47 = vsel %vm2279_vm11, %v398_v59, %v394_v41 }
  0x22   :  { %v364_v44 = vsel %vm2337_vm4, %v1967_v2, %v360_v37  ;;  %v338_v49 = vor.u32 1.1754944e-38, %v337_v7  ;;  %v1885_v50 = vmul.f32 -1.442695, %v20_v39  ;;  %vm2370_vm7 = vcmp.eq.f32.partialorder %v335_v1, 8.507059e+37  ;;  %v28_v2 = vld [vmem:[%s4626_s0 + $0x88] sm:$0xff]  ;;  %v31_v37 = vld [vmem:[%s4626_s0 + $0xa0] sm:$0xff] }
  0x23   :  { %v330_v48 = vadd.f32 %v1969_v15, %v329_v43  ;;  %v369_v51 = vsel %vm2292_vm14, %v368_v0, %v364_v44  ;;  %vm436_vm8 = vweird.f32 %v2305_v14  ;;  %1974 = vrcp.f32 %v2332_v29  ;;  %v29_v43 = vld [vmem:[%s4626_s0 + $0x90] sm:$0xff] }
  0x24   :  { %vm2381_vm9 = vcmp.eq.f32.partialorder %v440_v38, 8.507059e+37  ;;  %v443_v56 = vor.u32 1.1754944e-38, %v442_v34  ;;  %1976 = vpow2.f32 %v2242_v35  ;;  %vm421_vm10 = vweird.f32 %v2309_v19  ;;  %v30_v38 = vld [vmem:[%s4626_s0 + $0x98] sm:$0xff] }
  0x25   :  { %v1971_v53 = vpop.eup %1970  ;;  %v334_v54 = vsel %vm2362_vm5, %v1969_v15, %v330_v48  ;;  %v425_v58 = vand.u32 2147483647, %v2309_v19  ;;  %v427_v59 = vand.u32 2147483648, %v2309_v19  ;;  %vm406_vm11 = vweird.f32 %v2332_v29 }
  0x26   :  { %1358 = vperm.xlu2 %1939, %v399_v47   ;;  %v432_v57 = vmul.f32 %v1971_v53, %v2305_v14  ;;  %v339_v35 = vsel %vm2370_vm7, %v338_v49, %v334_v54  ;;  %1978 = vpow2.f32 %v1886_v46  ;;  %v1890_v63 = vmul.f32 -1.442695, %v25_v42  ;;  %v27_v14 = vld [vmem:[%s4626_s0 + $0x80] sm:$0xff] }
  0x27   :  { %v1973_v62 = vpop.eup %1972  ;;  %1348 = vperm.xlu1 %1938, %v369_v51   ;;  %vm437_vm12 = vweird.f32 %v1971_v53  ;;  %1980 = vpow2.f32 %v1885_v50  ;;  %v410_v3 = vand.u32 2147483647, %v2332_v29  ;;  %v1889_v4 = vmul.f32 -1.442695, %v24_v60 }
  0x28   :  { %v433_v0 = vsub.f32 1.0, %v432_v57  ;;  %v417_v1 = vmul.f32 %v1973_v62, %v2309_v19  ;;  %1982 = vpow2.f32 %v1890_v63  ;;  %v1888_v5 = vmul.f32 -1.442695, %v23_v61  ;;  %vm2408_vm14 = vmor %vm436_vm8, %vm437_vm12 }
  0x29   :  { %v1975_v6 = vpop.eup %1974  ;;  %1338 = vperm.xlu0 %1937, %v339_v35   ;;  %vm422_vm13 = vweird.f32 %v1973_v62  ;;  %v412_v9 = vand.u32 2147483648, %v2332_v29  ;;  %vm2412_vm15 = vcmp.eq.f32.partialorder %v425_v58, 8.507059e+37  ;;  %v428_v13 = vor.u32 1.1754944e-38, %v427_v59 }
  0x2a   :  { %v434_v7 = vmul.f32 %v1971_v53, %v433_v0  ;;  %v418_v8 = vsub.f32 1.0, %v417_v1  ;;  %v1977_v10 = vpop.eup %1976  ;;  %v402_v15 = vmul.f32 %v1975_v6, %v2332_v29  ;;  %v1893_v16 = vmul.f32 -1.442695, %v28_v2  ;;  %vm2428_vm0 = vmor %vm421_vm10, %vm422_vm13 }
  0x2b   :  { %v2417_v20 = vadd.f32 1.0, %v1977_v10  ;;  %1984 = vpow2.f32 %v1889_v4  ;;  %vm407_vm6 = vweird.f32 %v1975_v6  ;;  %vm2432_vm1 = vcmp.eq.f32.partialorder %v410_v3, 8.507059e+37 }
  0x2c   :  { %v435_v17 = vadd.f32 %v1971_v53, %v434_v7  ;;  %v419_v18 = vmul.f32 %v1973_v62, %v418_v8  ;;  %v1979_v22 = vpop.eup %1978  ;;  %v403_v24 = vsub.f32 1.0, %v402_v15  ;;  %1986 = vpow2.f32 %v1888_v5  ;;  %vm2454_vm2 = vmor %vm406_vm11, %vm407_vm6 }
  0x2d   :  { %v1981_v26 = vpop.eup %1980  ;;  %v413_v30 = vor.u32 1.1754944e-38, %v412_v9  ;;  %1988 = vrcp.f32 %v2417_v20  ;;  %v1892_v33 = vmul.f32 -1.442695, %v27_v14  ;;  %v2441_v36 = vmul.f32 -1.442695, %v26_v21 }
  0x2e   :  { %v439_v27 = vsel %vm2408_vm14, %v1971_v53, %v435_v17  ;;  %v420_v28 = vadd.f32 %v1973_v62, %v419_v18  ;;  %v1983_v19 = vpop.eup %1982  ;;  %v404_v32 = vmul.f32 %v1975_v6, %v403_v24  ;;  %v2458_v40 = vadd.f32 1.0, %v1979_v22  ;;  %v34_v22 = vld [vmem:[%s4626_s0 + $0xb8] sm:$0xff] }
  0x2f   :  { %v444_v31 = vsel %vm2381_vm9, %v443_v56, %v439_v27  ;;  %v2460_v41 = vadd.f32 1.0, %v1981_v26  ;;  %1990 = vpow2.f32 %v1893_v16  ;;  %v485_v46 = vand.u32 2147483647, %v2417_v20 }
  0x30   :  { %1373 = vperm.xlu2 %1939, %v444_v31   ;;  %v424_v34 = vsel %vm2428_vm0, %v1973_v62, %v420_v28  ;;  %v405_v45 = vadd.f32 %v1975_v6, %v404_v32  ;;  %v2468_v29 = vadd.f32 1.0, %v1983_v19  ;;  %v487_v48 = vand.u32 2147483648, %v2417_v20  ;;  %v36_v28 = vld [vmem:[%s4626_s0 + $0xc8] sm:$0xff] }
  0x31   :  { %v429_v44 = vsel %vm2412_vm15, %v428_v13, %v424_v34  ;;  %v1985_v47 = vpop.eup %1984  ;;  %1992 = vrcp.f32 %v2458_v40  ;;  %v2472_v49 = vmul.f32 -1.442695, %v31_v37  ;;  %v2474_v50 = vmul.f32 -1.442695, %v30_v38  ;;  %v43_v13 = vld [vmem:[%s4626_s0 + $0x100] sm:$0xff] }
  0x32   :  { %1368 = vperm.xlu1 %1938, %v429_v44   ;;  %v1987_v51 = vpop.eup %1986  ;;  %v409_v52 = vsel %vm2454_vm2, %v1975_v6, %v405_v45  ;;  %v470_v42 = vand.u32 2147483647, %v2458_v40  ;;  %1994 = vrcp.f32 %v2460_v41  ;;  %v2480_v53 = vmul.f32 -1.442695, %v29_v43 }
  0x33   :  { %v1989_v54 = vpop.eup %1988  ;;  %v414_v55 = vsel %vm2432_vm1, %v413_v30, %v409_v52  ;;  %v472_v56 = vand.u32 2147483648, %v2458_v40  ;;  %v455_v57 = vand.u32 2147483647, %v2460_v41  ;;  %v457_v58 = vand.u32 2147483648, %v2460_v41 }
  0x34   :  { %1363 = vperm.xlu0 %1937, %v414_v55   ;;  %v477_v59 = vmul.f32 %v1989_v54, %v2417_v20  ;;  %vm481_vm4 = vweird.f32 %v2417_v20  ;;  %vm2489_vm3 = vcmp.eq.f32.partialorder %v485_v46, 8.507059e+37  ;;  %1996 = vrcp.f32 %v2468_v29 }
  0x35   :  { %v1991_v61 = vpop.eup %1990  ;;  %v488_v62 = vor.u32 1.1754944e-38, %v487_v48  ;;  %vm466_vm5 = vweird.f32 %v2458_v40  ;;  %vm451_vm7 = vweird.f32 %v2460_v41  ;;  %v530_v35 = vand.u32 2147483647, %v2468_v29 }
  0x36   :  { %v478_v63 = vsub.f32 1.0, %v477_v59  ;;  %vm482_vm8 = vweird.f32 %v1989_v54  ;;  %vm2497_vm9 = vcmp.eq.f32.partialorder %v470_v42, 8.507059e+37  ;;  %v2501_v1 = vadd.f32 1.0, %v1985_v47 }
  0x37   :  { %v2503_v2 = vadd.f32 1.0, %v1987_v51  ;;  %v1993_v3 = vpop.eup %1992  ;;  %v473_v4 = vor.u32 1.1754944e-38, %v472_v56  ;;  %vm2505_vm10 = vcmp.eq.f32.partialorder %v455_v57, 8.507059e+37  ;;  %v458_v6 = vor.u32 1.1754944e-38, %v457_v58  ;;  %vm2515_vm12 = vmor %vm481_vm4, %vm482_vm8 }
  0x38   :  { %vm526_vm11 = vweird.f32 %v2468_v29  ;;  %v1995_v7 = vpop.eup %1994  ;;  %v479_v8 = vmul.f32 %v1989_v54, %v478_v63  ;;  %v462_v9 = vmul.f32 %v1993_v3, %v2458_v40  ;;  %v532_v10 = vand.u32 2147483648, %v2468_v29 }
  0x39   :  { %1998 = vrcp.f32 %v2501_v1  ;;  %v447_v12 = vmul.f32 %v1995_v7, %v2460_v41  ;;  %vm2520_vm13 = vcmp.eq.f32.partialorder %v530_v35, 8.507059e+37  ;;  %v2524_v15 = vadd.f32 1.0, %v1991_v61 }
  0x3a   :  { %2000 = vpow2.f32 %v1892_v33  ;;  %v1997_v16 = vpop.eup %1996  ;;  %v480_v17 = vadd.f32 %v1989_v54, %v479_v8  ;;  %v463_v18 = vsub.f32 1.0, %v462_v9  ;;  %vm467_vm14 = vweird.f32 %v1993_v3  ;;  %v32_v9 = vld [vmem:[%s4626_s0 + $0xa8] sm:$0xff]  ;;  %v35_v33 = vld [vmem:[%s4626_s0 + $0xc0] sm:$0xff] }
  0x3b   :  { %2002 = vrcp.f32 %v2503_v2  ;;  %v448_v20 = vsub.f32 1.0, %v447_v12  ;;  %vm452_vm15 = vweird.f32 %v1995_v7  ;;  %v522_v14 = vmul.f32 %v1997_v16, %v2468_v29  ;;  %vm2539_vm0 = vmor %vm466_vm5, %vm467_vm14 }
  0x3c   :  { %v515_v21 = vand.u32 2147483647, %v2501_v1  ;;  %v484_v23 = vsel %vm2515_vm12, %v1989_v54, %v480_v17  ;;  %v464_v24 = vmul.f32 %v1993_v3, %v463_v18  ;;  %v533_v25 = vor.u32 1.1754944e-38, %v532_v10  ;;  %vm2546_vm1 = vmor %vm451_vm7, %vm452_vm15 }
  0x3d   :  { %v517_v26 = vand.u32 2147483648, %v2501_v1  ;;  %v489_v27 = vsel %vm2489_vm3, %v488_v62, %v484_v23  ;;  %v449_v30 = vmul.f32 %v1995_v7, %v448_v20  ;;  %v523_v19 = vsub.f32 1.0, %v522_v14 }
  0x3e   :  { %vm527_vm6 = vweird.f32 %v1997_v16  ;;  %1388 = vperm.xlu2 %1939, %v489_v27   ;;  %v465_v32 = vadd.f32 %v1993_v3, %v464_v24  ;;  %vm511_vm2 = vweird.f32 %v2501_v1  ;;  %2004 = vrcp.f32 %v2524_v15 }
  0x3f   :  { %v1999_v31 = vpop.eup %1998  ;;  %v2552_v37 = vmul.f32 -1.442695, %v34_v22  ;;  %v450_v34 = vadd.f32 %v1995_v7, %v449_v30  ;;  %v524_v39 = vmul.f32 %v1997_v16, %v523_v19  ;;  %vm2555_vm4 = vcmp.eq.f32.partialorder %v515_v21, 8.507059e+37  ;;  %vm2564_vm3 = vmor %vm526_vm11, %vm527_vm6 }
  0x40   :  { %v2001_v38 = vpop.eup %2000  ;;  %v507_v40 = vmul.f32 %v1999_v31, %v2501_v1  ;;  %v469_v44 = vsel %vm2539_vm0, %v1993_v3, %v465_v32  ;;  %vm512_vm5 = vweird.f32 %v1999_v31  ;;  %v518_v46 = vor.u32 1.1754944e-38, %v517_v26  ;;  %v33_v1 = vld [vmem:[%s4626_s0 + $0xb0] sm:$0xff] }
  0x41   :  { %v2003_v41 = vpop.eup %2002  ;;  %v500_v47 = vand.u32 2147483647, %v2503_v2  ;;  %v474_v48 = vsel %vm2497_vm9, %v473_v4, %v469_v44  ;;  %v454_v51 = vsel %vm2546_vm1, %v1995_v7, %v450_v34  ;;  %v525_v52 = vadd.f32 %v1997_v16, %v524_v39  ;;  %vm2588_vm9 = vmor %vm511_vm2, %vm512_vm5 }
  0x42   :  { %v508_v42 = vsub.f32 1.0, %v507_v40  ;;  %1383 = vperm.xlu1 %1938, %v474_v48   ;;  %v459_v29 = vsel %vm2505_vm10, %v458_v6, %v454_v51  ;;  %v492_v54 = vmul.f32 %v2003_v41, %v2503_v2  ;;  %vm496_vm7 = vweird.f32 %v2503_v2 }
  0x43   :  { %v502_v55 = vand.u32 2147483648, %v2503_v2  ;;  %1378 = vperm.xlu0 %1937, %v459_v29   ;;  %v529_v56 = vsel %vm2564_vm3, %v1997_v16, %v525_v52  ;;  %vm571_vm8 = vweird.f32 %v2524_v15  ;;  %v2581_v58 = vadd.f32 1.0, %v2001_v38 }
  0x44   :  { %v509_v57 = vmul.f32 %v1999_v31, %v508_v42  ;;  %v2005_v59 = vpop.eup %2004  ;;  %v534_v60 = vsel %vm2520_vm13, %v533_v25, %v529_v56  ;;  %v493_v62 = vsub.f32 1.0, %v492_v54  ;;  %vm497_vm10 = vweird.f32 %v2003_v41 }
  0x45   :  { %2006 = vpow2.f32 %v2441_v36  ;;  %vm2593_vm11 = vcmp.eq.f32.partialorder %v500_v47, 8.507059e+37  ;;  %v567_v0 = vmul.f32 %v2005_v59, %v2524_v15  ;;  %v575_v3 = vand.u32 2147483647, %v2524_v15  ;;  %vm2608_vm12 = vmor %vm496_vm7, %vm497_vm10 }
  0x46   :  { %v510_v35 = vadd.f32 %v1999_v31, %v509_v57  ;;  %1403 = vperm.xlu2 %1939, %v534_v60   ;;  %v494_v4 = vmul.f32 %v2003_v41, %v493_v62  ;;  %v503_v5 = vor.u32 1.1754944e-38, %v502_v55  ;;  %v577_v6 = vand.u32 2147483648, %v2524_v15 }
  0x47   :  { %2008 = vrcp.f32 %v2581_v58  ;;  %v568_v8 = vsub.f32 1.0, %v567_v0  ;;  %vm572_vm13 = vweird.f32 %v2005_v59  ;;  %v1898_v12 = vmul.f32 -1.442695, %v33_v1 }
  0x48   :  { %v514_v36 = vsel %vm2588_vm9, %v1999_v31, %v510_v35  ;;  %2010 = vpow2.f32 %v2472_v49  ;;  %v495_v11 = vadd.f32 %v2003_v41, %v494_v4  ;;  %vm2619_vm14 = vcmp.eq.f32.partialorder %v575_v3, 8.507059e+37  ;;  %v37_v49 = vld [vmem:[%s4626_s0 + $0xd0] sm:$0xff]  ;;  %vm2631_vm15 = vmor %vm571_vm8, %vm572_vm13 }
  0x49   :  { %v519_v10 = vsel %vm2555_vm4, %v518_v46, %v514_v36  ;;  %2012 = vpow2.f32 %v2474_v50  ;;  %v569_v2 = vmul.f32 %v2005_v59, %v568_v8  ;;  %v578_v18 = vor.u32 1.1754944e-38, %v577_v6 }
  0x4a   :  { %2014 = vpow2.f32 %v2480_v53  ;;  %1398 = vperm.xlu1 %1938, %v519_v10   ;;  %v499_v17 = vsel %vm2608_vm12, %v2003_v41, %v495_v11  ;;  %v560_v20 = vand.u32 2147483647, %v2581_v58  ;;  %v1897_v14 = vmul.f32 -1.442695, %v32_v9 }
  0x4b   :  { %v2007_v16 = vpop.eup %2006  ;;  %v504_v53 = vsel %vm2593_vm11, %v503_v5, %v499_v17  ;;  %v570_v21 = vadd.f32 %v2005_v59, %v569_v2  ;;  %2016 = vpow2.f32 %v2552_v37  ;;  %vm556_vm0 = vweird.f32 %v2581_v58 }
  0x4c   :  { %v2638_v22 = vadd.f32 1.0, %v2007_v16  ;;  %1393 = vperm.xlu0 %1937, %v504_v53   ;;  %2018 = vpow2.f32 %v1898_v12  ;;  %v1902_v15 = vmul.f32 -1.442695, %v37_v49  ;;  %v562_v27 = vand.u32 2147483648, %v2581_v58 }
  0x4d   :  { %v2009_v23 = vpop.eup %2008  ;;  %v574_v25 = vsel %vm2631_vm15, %v2005_v59, %v570_v21  ;;  %vm2652_vm6 = vcmp.eq.f32.partialorder %v560_v20, 8.507059e+37  ;;  %v1901_v41 = vmul.f32 -1.442695, %v36_v28  ;;  %v2668_v47 = vmul.f32 -1.442695, %v35_v33 }
  0x4e   :  { %v2011_v24 = vpop.eup %2010  ;;  %v552_v26 = vmul.f32 %v2009_v23, %v2581_v58  ;;  %2020 = vrcp.f32 %v2638_v22  ;;  %v579_v19 = vsel %vm2619_vm14, %v578_v18, %v574_v25  ;;  %v545_v32 = vand.u32 2147483647, %v2638_v22 }
  0x4f   :  { %v2013_v30 = vpop.eup %2012  ;;  %2022 = vpow2.f32 %v1897_v14  ;;  %1418 = vperm.xlu2 %1939, %v579_v19   ;;  %vm557_vm1 = vweird.f32 %v2009_v23  ;;  %v2660_v34 = vadd.f32 1.0, %v2011_v24  ;;  %v547_v40 = vand.u32 2147483648, %v2638_v22 }
  0x50   :  { %v2015_v37 = vpop.eup %2014  ;;  %v553_v38 = vsub.f32 1.0, %v552_v26  ;;  %v2662_v39 = vadd.f32 1.0, %v2013_v30  ;;  %2024 = vpow2.f32 %v1902_v15  ;;  %v563_v46 = vor.u32 1.1754944e-38, %v562_v27  ;;  %vm2672_vm2 = vmor %vm556_vm0, %vm557_vm1 }
  0x51   :  { %v2665_v43 = vadd.f32 1.0, %v2015_v37  ;;  %v2017_v44 = vpop.eup %2016  ;;  %2026 = vrcp.f32 %v2660_v34  ;;  %vm541_vm4 = vweird.f32 %v2638_v22  ;;  %vm2677_vm3 = vcmp.eq.f32.partialorder %v545_v32, 8.507059e+37 }
  0x52   :  { %v554_v45 = vmul.f32 %v2009_v23, %v553_v38  ;;  %v2019_v48 = vpop.eup %2018  ;;  %v620_v42 = vand.u32 2147483647, %v2660_v34  ;;  %2028 = vrcp.f32 %v2662_v39  ;;  %v622_v55 = vand.u32 2147483648, %v2660_v34 }
  0x53   :  { %v605_v56 = vand.u32 2147483647, %v2662_v39  ;;  %2030 = vrcp.f32 %v2665_v43  ;;  %v548_v59 = vor.u32 1.1754944e-38, %v547_v40  ;;  %v607_v60 = vand.u32 2147483648, %v2662_v39 }
  0x54   :  { %v2021_v29 = vpop.eup %2020  ;;  %v555_v54 = vadd.f32 %v2009_v23, %v554_v45  ;;  %2032 = vpow2.f32 %v1901_v41  ;;  %vm616_vm5 = vweird.f32 %v2660_v34  ;;  %vm601_vm7 = vweird.f32 %v2662_v39 }
  0x55   :  { %v2023_v57 = vpop.eup %2022  ;;  %v537_v58 = vmul.f32 %v2021_v29, %v2638_v22  ;;  %v590_v62 = vand.u32 2147483647, %v2665_v43  ;;  %vm542_vm8 = vweird.f32 %v2021_v29  ;;  %v2695_v3 = vadd.f32 1.0, %v2017_v44 }
  0x56   :  { %v559_v61 = vsel %vm2672_vm2, %v2009_v23, %v555_v54  ;;  %v2025_v35 = vpop.eup %2024  ;;  %vm2697_vm9 = vcmp.eq.f32.partialorder %v620_v42, 8.507059e+37  ;;  %v623_v5 = vor.u32 1.1754944e-38, %v622_v55  ;;  %vm2701_vm10 = vcmp.eq.f32.partialorder %v605_v56, 8.507059e+37  ;;  %vm2711_vm12 = vmor %vm541_vm4, %vm542_vm8 }
  0x57   :  { %v564_v63 = vsel %vm2652_vm6, %v563_v46, %v559_v61  ;;  %v538_v0 = vsub.f32 1.0, %v537_v58  ;;  %v2027_v1 = vpop.eup %2026  ;;  %v2705_v36 = vadd.f32 1.0, %v2019_v48  ;;  %v608_v10 = vor.u32 1.1754944e-38, %v607_v60 }
  0x58   :  { %1413 = vperm.xlu1 %1938, %v564_v63   ;;  %v2029_v7 = vpop.eup %2028  ;;  %v612_v9 = vmul.f32 %v2027_v1, %v2660_v34  ;;  %vm586_vm11 = vweird.f32 %v2665_v43  ;;  %vm2716_vm13 = vcmp.eq.f32.partialorder %v590_v62, 8.507059e+37  ;;  %v592_v49 = vand.u32 2147483648, %v2665_v43 }
  0x59   :  { %v539_v8 = vmul.f32 %v2021_v29, %v538_v0  ;;  %v2031_v11 = vpop.eup %2030  ;;  %v597_v2 = vmul.f32 %v2029_v7, %v2662_v39  ;;  %2034 = vrcp.f32 %v2695_v3  ;;  %vm617_vm14 = vweird.f32 %v2027_v1 }
  0x5a   :  { %v2033_v16 = vpop.eup %2032  ;;  %v613_v50 = vsub.f32 1.0, %v612_v9  ;;  %v582_v18 = vmul.f32 %v2031_v11, %v2665_v43  ;;  %vm602_vm15 = vweird.f32 %v2029_v7  ;;  %2036 = vrcp.f32 %v2705_v36  ;;  %vm2732_vm6 = vmor %vm616_vm5, %vm617_vm14 }
  0x5b   :  { %v540_v17 = vadd.f32 %v2021_v29, %v539_v8  ;;  %v598_v20 = vsub.f32 1.0, %v597_v2  ;;  %v2724_v14 = vadd.f32 1.0, %v2023_v57  ;;  %vm587_vm0 = vweird.f32 %v2031_v11  ;;  %vm2740_vm1 = vmor %vm601_vm7, %vm602_vm15  ;;  %v38_v2 = vld [vmem:[%s4626_s0 + $0xd8] sm:$0xff] }
  0x5c   :  { %v614_v21 = vmul.f32 %v2027_v1, %v613_v50  ;;  %v583_v22 = vsub.f32 1.0, %v582_v18  ;;  %v593_v25 = vor.u32 1.1754944e-38, %v592_v49  ;;  %v2736_v26 = vadd.f32 1.0, %v2025_v35  ;;  %vm2748_vm4 = vmor %vm586_vm11, %vm587_vm0 }
  0x5d   :  { %v544_v53 = vsel %vm2711_vm12, %v2021_v29, %v540_v17  ;;  %v599_v24 = vmul.f32 %v2029_v7, %v598_v20  ;;  %vm661_vm2 = vweird.f32 %v2695_v3  ;;  %v665_v19 = vand.u32 2147483647, %v2695_v3 }
  0x5e   :  { %v549_v23 = vsel %vm2677_vm3, %v548_v59, %v544_v53  ;;  %v615_v27 = vadd.f32 %v2027_v1, %v614_v21  ;;  %v584_v30 = vmul.f32 %v2031_v11, %v583_v22  ;;  %v667_v37 = vand.u32 2147483648, %v2695_v3 }
  0x5f   :  { %1408 = vperm.xlu0 %1937, %v549_v23   ;;  %v2035_v31 = vpop.eup %2034  ;;  %v600_v32 = vadd.f32 %v2029_v7, %v599_v24  ;;  %vm646_vm3 = vweird.f32 %v2705_v36  ;;  %2038 = vrcp.f32 %v2724_v14  ;;  %v650_v40 = vand.u32 2147483647, %v2705_v36 }
  0x60   :  { %v619_v38 = vsel %vm2732_vm6, %v2027_v1, %v615_v27  ;;  %v585_v34 = vadd.f32 %v2031_v11, %v584_v30  ;;  %v657_v39 = vmul.f32 %v2035_v31, %v2695_v3  ;;  %v2037_v41 = vpop.eup %2036  ;;  %vm662_vm5 = vweird.f32 %v2035_v31  ;;  %v40_v1 = vld [vmem:[%s4626_s0 + $0xe8] sm:$0xff] }
  0x61   :  { %v624_v43 = vsel %vm2697_vm9, %v623_v5, %v619_v38  ;;  %v604_v44 = vsel %vm2740_vm1, %v2029_v7, %v600_v32  ;;  %v652_v45 = vand.u32 2147483648, %v2705_v36  ;;  %v642_v52 = vmul.f32 %v2037_v41, %v2705_v36  ;;  %vm2780_vm9 = vmor %vm661_vm2, %vm662_vm5  ;;  %v39_v7 = vld [vmem:[%s4626_s0 + $0xe0] sm:$0xff] }
  0x62   :  { %1433 = vperm.xlu2 %1939, %v624_v43   ;;  %v609_v46 = vsel %vm2701_vm10, %v608_v10, %v604_v44  ;;  %v589_v48 = vsel %vm2748_vm4, %v2031_v11, %v585_v34  ;;  %v658_v51 = vsub.f32 1.0, %v657_v39  ;;  %vm2771_vm7 = vcmp.eq.f32.partialorder %v665_v19, 8.507059e+37  ;;  %v46_v43 = vld [vmem:[%s4626_s0 + $0x118] sm:$0xff] }
  0x63   :  { %1428 = vperm.xlu1 %1938, %v609_v46   ;;  %v594_v42 = vsel %vm2716_vm13, %v593_v25, %v589_v48  ;;  %v668_v54 = vor.u32 1.1754944e-38, %v667_v37  ;;  %v635_v55 = vand.u32 2147483647, %v2724_v14  ;;  %v643_v57 = vsub.f32 1.0, %v642_v52  ;;  %v45_v52 = vld [vmem:[%s4626_s0 + $0x110] sm:$0xff] }
  0x64   :  { %v659_v56 = vmul.f32 %v2035_v31, %v658_v51  ;;  %vm647_vm8 = vweird.f32 %v2037_v41  ;;  %2040 = vrcp.f32 %v2736_v26  ;;  %vm2784_vm10 = vcmp.eq.f32.partialorder %v650_v40, 8.507059e+37 }
  0x65   :  { %v2039_v58 = vpop.eup %2038  ;;  %vm631_vm11 = vweird.f32 %v2724_v14  ;;  %v637_v61 = vand.u32 2147483648, %v2724_v14  ;;  %v2790_v62 = vadd.f32 1.0, %v2033_v16  ;;  %v644_v63 = vmul.f32 %v2037_v41, %v643_v57  ;;  %vm2798_vm12 = vmor %vm646_vm3, %vm647_vm8 }
  0x66   :  { %v660_v35 = vadd.f32 %v2035_v31, %v659_v56  ;;  %v653_v0 = vor.u32 1.1754944e-38, %v652_v45  ;;  %v627_v3 = vmul.f32 %v2039_v58, %v2724_v14  ;;  %vm2802_vm13 = vcmp.eq.f32.partialorder %v635_v55, 8.507059e+37  ;;  %v41_v14 = vld [vmem:[%s4626_s0 + $0xf0] sm:$0xff] }
  0x67   :  { %1423 = vperm.xlu0 %1937, %v594_v42   ;;  %vm706_vm14 = vweird.f32 %v2736_v26  ;;  %v712_v6 = vand.u32 2147483648, %v2736_v26  ;;  %2042 = vrcp.f32 %v2790_v62  ;;  %v645_v8 = vadd.f32 %v2037_v41, %v644_v63  ;;  %v44_v42 = vld [vmem:[%s4626_s0 + $0x108] sm:$0xff] }
  0x68   :  { %v664_v36 = vsel %vm2780_vm9, %v2035_v31, %v660_v35  ;;  %v628_v9 = vsub.f32 1.0, %v627_v3  ;;  %vm632_vm15 = vweird.f32 %v2039_v58  ;;  %v638_v11 = vor.u32 1.1754944e-38, %v637_v61 }
  0x69   :  { %v669_v10 = vsel %vm2771_vm7, %v668_v54, %v664_v36  ;;  %2044 = vpow2.f32 %v2668_v47  ;;  %v1905_v12 = vmul.f32 -1.442695, %v40_v1  ;;  %v649_v16 = vsel %vm2798_vm12, %v2037_v41, %v645_v8  ;;  %v42_v47 = vld [vmem:[%s4626_s0 + $0xf8] sm:$0xff]  ;;  %vm2834_vm0 = vmor %vm631_vm11, %vm632_vm15 }
  0x6a   :  { %v2041_v49 = vpop.eup %2040  ;;  %1448 = vperm.xlu2 %1939, %v669_v10   ;;  %v629_v17 = vmul.f32 %v2039_v58, %v628_v9  ;;  %v710_v50 = vand.u32 2147483647, %v2736_v26  ;;  %v1904_v18 = vmul.f32 -1.442695, %v39_v7  ;;  %v654_v20 = vsel %vm2784_vm10, %v653_v0, %v649_v16 }
  0x6b   :  { %v702_v21 = vmul.f32 %v2041_v49, %v2736_v26  ;;  %v713_v22 = vor.u32 1.1754944e-38, %v712_v6  ;;  %v695_v23 = vand.u32 2147483647, %v2790_v62  ;;  %1443 = vperm.xlu1 %1938, %v654_v20   ;;  %2046 = vpow2.f32 %v1905_v12 }
  0x6c   :  { %v630_v15 = vadd.f32 %v2039_v58, %v629_v17  ;;  %v1903_v24 = vmul.f32 -1.442695, %v38_v2  ;;  %v1908_v25 = vmul.f32 -1.442695, %v43_v13  ;;  %vm707_vm6 = vweird.f32 %v2041_v49 }
  0x6d   :  { %v2043_v27 = vpop.eup %2042  ;;  %v703_v28 = vsub.f32 1.0, %v702_v21  ;;  %2048 = vpow2.f32 %v1904_v18  ;;  %v1907_v30 = vmul.f32 -1.442695, %v42_v47  ;;  %v697_v32 = vand.u32 2147483648, %v2790_v62  ;;  %vm2852_vm2 = vmor %vm706_vm14, %vm707_vm6 }
  0x6e   :  { %v634_v19 = vsel %vm2834_vm0, %v2039_v58, %v630_v15  ;;  %v687_v31 = vmul.f32 %v2043_v27, %v2790_v62  ;;  %2050 = vpow2.f32 %v1903_v24  ;;  %vm691_vm1 = vweird.f32 %v2790_v62 }
  0x6f   :  { %v2045_v33 = vpop.eup %2044  ;;  %v639_v37 = vsel %vm2802_vm13, %v638_v11, %v634_v19  ;;  %v704_v38 = vmul.f32 %v2041_v49, %v703_v28  ;;  %2052 = vpow2.f32 %v1908_v25  ;;  %vm692_vm4 = vweird.f32 %v2043_v27 }
  0x70   :  { %1438 = vperm.xlu0 %1937, %v639_v37   ;;  %v688_v39 = vsub.f32 1.0, %v687_v31  ;;  %v2856_v40 = vadd.f32 1.0, %v2045_v33  ;;  %v1906_v41 = vmul.f32 -1.442695, %v41_v14  ;;  %vm2861_vm3 = vcmp.eq.f32.partialorder %v710_v50, 8.507059e+37  ;;  %vm2881_vm7 = vmor %vm691_vm1, %vm692_vm4 }
  0x71   :  { %v705_v44 = vadd.f32 %v2041_v49, %v704_v38  ;;  %2054 = vpow2.f32 %v1907_v30  ;;  %v2047_v26 = vpop.eup %2046  ;;  %vm2865_vm5 = vcmp.eq.f32.partialorder %v695_v23, 8.507059e+37  ;;  %v698_v51 = vor.u32 1.1754944e-38, %v697_v32  ;;  %v49_v23 = vld [vmem:[%s4626_s0 + $0x130] sm:$0xff] }
  0x72   :  { %v689_v46 = vmul.f32 %v2043_v27, %v688_v39  ;;  %2056 = vrcp.f32 %v2856_v40  ;;  %v680_v56 = vand.u32 2147483647, %v2856_v40  ;;  %v2886_v57 = vadd.f32 1.0, %v2047_v26 }
  0x73   :  { %v2049_v29 = vpop.eup %2048  ;;  %v709_v54 = vsel %vm2852_vm2, %v2041_v49, %v705_v44  ;;  %v1911_v58 = vmul.f32 -1.442695, %v46_v43  ;;  %2058 = vpow2.f32 %v1906_v41  ;;  %v682_v62 = vand.u32 2147483648, %v2856_v40 }
  0x74   :  { %v2051_v59 = vpop.eup %2050  ;;  %v714_v60 = vsel %vm2861_vm3, %v713_v22, %v709_v54  ;;  %v690_v61 = vadd.f32 %v2043_v27, %v689_v46  ;;  %v2890_v35 = vadd.f32 1.0, %v2049_v29  ;;  %2060 = vrcp.f32 %v2886_v57 }
  0x75   :  { %v2053_v63 = vpop.eup %2052  ;;  %1463 = vperm.xlu2 %1939, %v714_v60   ;;  %v2894_v0 = vmul.f32 -1.442695, %v45_v52  ;;  %v2896_v3 = vmul.f32 -1.442695, %v44_v42  ;;  %v755_v4 = vand.u32 2147483647, %v2886_v57  ;;  %vm676_vm8 = vweird.f32 %v2856_v40 }
  0x76   :  { %v694_v1 = vsel %vm2881_vm7, %v2043_v27, %v690_v61  ;;  %v757_v5 = vand.u32 2147483648, %v2886_v57  ;;  %2062 = vrcp.f32 %v2890_v35  ;;  %vm2906_vm9 = vcmp.eq.f32.partialorder %v680_v56, 8.507059e+37  ;;  %v51_v42 = vld [vmem:[%s4626_s0 + $0x140] sm:$0xff] }
  0x77   :  { %v2055_v6 = vpop.eup %2054  ;;  %v699_v7 = vsel %vm2865_vm5, %v698_v51, %v694_v1  ;;  %2064 = vpow2.f32 %v1911_v58  ;;  %v740_v9 = vand.u32 2147483647, %v2890_v35  ;;  %v742_v10 = vand.u32 2147483648, %v2890_v35 }
  0x78   :  { %v2057_v8 = vpop.eup %2056  ;;  %1458 = vperm.xlu1 %1938, %v699_v7   ;;  %v2912_v11 = vadd.f32 1.0, %v2051_v59  ;;  %v2914_v12 = vadd.f32 1.0, %v2053_v63  ;;  %v683_v13 = vor.u32 1.1754944e-38, %v682_v62  ;;  %vm751_vm10 = vweird.f32 %v2886_v57 }
  0x79   :  { %v672_v2 = vmul.f32 %v2057_v8, %v2856_v40  ;;  %vm736_vm11 = vweird.f32 %v2890_v35  ;;  %v2059_v49 = vpop.eup %2058  ;;  %vm677_vm12 = vweird.f32 %v2057_v8  ;;  %vm2919_vm13 = vcmp.eq.f32.partialorder %v755_v4, 8.507059e+37  ;;  %v50_v4 = vld [vmem:[%s4626_s0 + $0x138] sm:$0xff] }
  0x7a   :  { %v758_v17 = vor.u32 1.1754944e-38, %v757_v5  ;;  %2066 = vrcp.f32 %v2912_v11  ;;  %v2924_v50 = vadd.f32 1.0, %v2055_v6  ;;  %v2061_v18 = vpop.eup %2060  ;;  %v725_v20 = vand.u32 2147483647, %v2912_v11  ;;  %vm2941_vm6 = vmor %vm676_vm8, %vm677_vm12 }
  0x7b   :  { %v673_v47 = vsub.f32 1.0, %v672_v2  ;;  %v727_v53 = vand.u32 2147483648, %v2912_v11  ;;  %2068 = vrcp.f32 %v2914_v12  ;;  %v747_v22 = vmul.f32 %v2061_v18, %v2886_v57 }
  0x7c   :  { %v2063_v21 = vpop.eup %2062  ;;  %vm2930_vm14 = vcmp.eq.f32.partialorder %v740_v9, 8.507059e+37  ;;  %v743_v15 = vor.u32 1.1754944e-38, %v742_v10  ;;  %v800_v24 = vand.u32 2147483647, %v2914_v12  ;;  %vm721_vm15 = vweird.f32 %v2912_v11  ;;  %v1354_v10 = vpop.permute.xlu2 %1353 }
  0x7d   :  { %v2065_v25 = vpop.eup %2064  ;;  %v674_v27 = vmul.f32 %v2057_v8, %v673_v47  ;;  %v732_v28 = vmul.f32 %v2063_v21, %v2890_v35  ;;  %vm796_vm0 = vweird.f32 %v2914_v12  ;;  %v748_v14 = vsub.f32 1.0, %v747_v22  ;;  %v1220_v22 = vld [vmem:[%s4627_s1 + $0x48] sm:$0xff] }
  0x7e   :  { %vm752_vm1 = vweird.f32 %v2061_v18  ;;  %v802_v19 = vand.u32 2147483648, %v2914_v12  ;;  %2070 = vrcp.f32 %v2924_v50  ;;  %vm737_vm2 = vweird.f32 %v2063_v21 }
  0x7f   :  { %v675_v31 = vadd.f32 %v2057_v8, %v674_v27  ;;  %v733_v32 = vsub.f32 1.0, %v732_v28  ;;  %vm2947_vm4 = vcmp.eq.f32.partialorder %v725_v20, 8.507059e+37  ;;  %v728_v37 = vor.u32 1.1754944e-38, %v727_v53  ;;  %vm2964_vm7 = vmor %vm751_vm10, %vm752_vm1  ;;  %v47_v28 = vld [vmem:[%s4626_s0 + $0x120] sm:$0xff] }
  0x80   :  { %v2067_v38 = vpop.eup %2066  ;;  %v749_v34 = vmul.f32 %v2061_v18, %v748_v14  ;;  %vm2951_vm3 = vcmp.eq.f32.partialorder %v800_v24, 8.507059e+37  ;;  %vm781_vm5 = vweird.f32 %v2924_v50  ;;  %v785_v40 = vand.u32 2147483647, %v2924_v50  ;;  %vm2975_vm8 = vmor %vm736_vm11, %vm737_vm2 }
  0x81   :  { %v2957_v41 = vadd.f32 1.0, %v2059_v49  ;;  %v2069_v43 = vpop.eup %2068  ;;  %v679_v44 = vsel %vm2941_vm6, %v2057_v8, %v675_v31  ;;  %v734_v26 = vmul.f32 %v2063_v21, %v733_v32  ;;  %v717_v46 = vmul.f32 %v2067_v38, %v2912_v11 }
  0x82   :  { %v787_v48 = vand.u32 2147483648, %v2924_v50  ;;  %v684_v51 = vsel %vm2906_vm9, %v683_v13, %v679_v44  ;;  %v750_v52 = vadd.f32 %v2061_v18, %v749_v34  ;;  %v792_v29 = vmul.f32 %v2069_v43, %v2914_v12  ;;  %v52_v34 = vld [vmem:[%s4626_s0 + $0x148] sm:$0xff]  ;;  %v1222_v44 = vld [vmem:[%s4627_s1 + $0x58] sm:$0xff] }
  0x83   :  { %v803_v54 = vor.u32 1.1754944e-38, %v802_v19  ;;  %1453 = vperm.xlu0 %1937, %v684_v51   ;;  %v735_v55 = vadd.f32 %v2063_v21, %v734_v26  ;;  %v718_v56 = vsub.f32 1.0, %v717_v46  ;;  %vm722_vm10 = vweird.f32 %v2067_v38 }
  0x84   :  { %v2980_v57 = vadd.f32 1.0, %v2065_v25  ;;  %v2071_v58 = vpop.eup %2070  ;;  %v754_v59 = vsel %vm2964_vm7, %v2061_v18, %v750_v52  ;;  %v793_v60 = vsub.f32 1.0, %v792_v29  ;;  %vm797_vm9 = vweird.f32 %v2069_v43  ;;  %vm2994_vm11 = vmor %vm721_vm15, %vm722_vm10  ;;  %v1359_v45 = vpop.permute.xlu2 %1358 }
  0x85   :  { %2072 = vrcp.f32 %v2957_v41  ;;  %v759_v61 = vsel %vm2919_vm13, %v758_v17, %v754_v59  ;;  %v739_v35 = vsel %vm2975_vm8, %v2063_v21, %v735_v55  ;;  %v719_v63 = vmul.f32 %v2067_v38, %v718_v56  ;;  %vm3002_vm13 = vmor %vm796_vm0, %vm797_vm9  ;;  %v1219_v17 = vld [vmem:[%s4627_s1 + $0x40] sm:$0xff] }
  0x86   :  { %v777_v62 = vmul.f32 %v2071_v58, %v2924_v50  ;;  %1478 = vperm.xlu2 %1939, %v759_v61   ;;  %v744_v1 = vsel %vm2930_vm14, %v743_v15, %v739_v35  ;;  %v794_v5 = vmul.f32 %v2069_v43, %v793_v60  ;;  %vm782_vm12 = vweird.f32 %v2071_v58 }
  0x87   :  { %v770_v6 = vand.u32 2147483647, %v2957_v41  ;;  %1473 = vperm.xlu1 %1938, %v744_v1   ;;  %v720_v7 = vadd.f32 %v2067_v38, %v719_v63  ;;  %v772_v9 = vand.u32 2147483648, %v2957_v41  ;;  %2074 = vrcp.f32 %v2980_v57  ;;  %vm3032_vm1 = vmor %vm781_vm5, %vm782_vm12 }
  0x88   :  { %v778_v8 = vsub.f32 1.0, %v777_v62  ;;  %v795_v11 = vadd.f32 %v2069_v43, %v794_v5  ;;  %vm3008_vm14 = vcmp.eq.f32.partialorder %v785_v40, 8.507059e+37  ;;  %v788_v13 = vor.u32 1.1754944e-38, %v787_v48 }
  0x89   :  { %vm766_vm15 = vweird.f32 %v2957_v41  ;;  %v724_v12 = vsel %vm2994_vm11, %v2067_v38, %v720_v7  ;;  %vm3015_vm0 = vcmp.eq.f32.partialorder %v770_v6, 8.507059e+37  ;;  %vm841_vm6 = vweird.f32 %v2980_v57  ;;  %v55_v6 = vld [vmem:[%s4626_s0 + $0x160] sm:$0xff] }
  0x8a   :  { %v779_v49 = vmul.f32 %v2071_v58, %v778_v8  ;;  %v729_v47 = vsel %vm2947_vm4, %v728_v37, %v724_v12  ;;  %v799_v20 = vsel %vm3002_vm13, %v2069_v43, %v795_v11  ;;  %v845_v21 = vand.u32 2147483647, %v2980_v57  ;;  %v1221_v43 = vld [vmem:[%s4627_s1 + $0x50] sm:$0xff]  ;;  %v1227_v12 = vld [vmem:[%s4627_s1 + $0x80] sm:$0xff] }
  0x8b   :  { %v3023_v18 = vpop.eup %2072  ;;  %2076 = vpow2.f32 %v2894_v0  ;;  %1468 = vperm.xlu0 %1937, %v729_v47   ;;  %v804_v50 = vsel %vm2951_vm3, %v803_v54, %v799_v20  ;;  %v773_v25 = vor.u32 1.1754944e-38, %v772_v9  ;;  %v48_v0 = vld [vmem:[%s4626_s0 + $0x128] sm:$0xff]  ;;  %vm1752_vm4 = vcmask 556032   ;;  %v54_v9 = vld [vmem:[%s4626_s0 + $0x158] sm:$0xff] }
  0x8c   :  { %v780_v15 = vadd.f32 %v2071_v58, %v779_v49  ;;  %v762_v24 = vmul.f32 %v3023_v18, %v2957_v41  ;;  %vm767_vm2 = vweird.f32 %v3023_v18  ;;  %2078 = vpow2.f32 %v2896_v3 }
  0x8d   :  { %v1639_v27 = vmul.f32 %v1354_v10, %v1219_v17  ;;  %v2075_v30 = vpop.eup %2074  ;;  %v1640_v31 = vmul.f32 %v1354_v10, %v1220_v22  ;;  %v1914_v32 = vmul.f32 -1.442695, %v49_v23  ;;  %v847_v3 = vand.u32 2147483648, %v2980_v57  ;;  %vm3083_vm5 = vmor %vm766_vm15, %vm767_vm2 }
  0x8e   :  { %v784_v14 = vsel %vm3032_vm1, %v2071_v58, %v780_v15  ;;  %v763_v19 = vsub.f32 1.0, %v762_v24  ;;  %1493 = vperm.xlu2 %1939, %v804_v50   ;;  %v837_v37 = vmul.f32 %v2075_v30, %v2980_v57  ;;  %v1913_v38 = vmul.f32 -1.442695, %v48_v0 }
  0x8f   :  { %v789_v33 = vsel %vm3008_vm14, %v788_v13, %v784_v14  ;;  %1760 = vst [vmem:[%s4628_s2 + $0x40] sm:$0xff] %v1639_v27  ;;  %vm842_vm3 = vweird.f32 %v2075_v30  ;;  %2080 = vpow2.f32 %v1914_v32  ;;  %v1912_v40 = vmul.f32 -1.442695, %v47_v28 }
  0x90   :  { %1488 = vperm.xlu1 %1938, %v789_v33   ;;  %v764_v39 = vmul.f32 %v3023_v18, %v763_v19  ;;  %1761 = vst.msk [vmem:[%s4628_s2 + $0x48] sm:$0xff] %vm1752_vm4, %v1640_v31  ;;  %v838_v48 = vsub.f32 1.0, %v837_v37  ;;  %2082 = vpow2.f32 %v1913_v38  ;;  %v1641_v51 = vmul.f32 %v1359_v45, %v1221_v43  ;;  %vm3106_vm8 = vmor %vm841_vm6, %vm842_vm3 }
  0x91   :  { %v2077_v26 = vpop.eup %2076  ;;  %v1642_v52 = vmul.f32 %v1359_v45, %v1222_v44  ;;  %2084 = vpow2.f32 %v1912_v40  ;;  %v1917_v55 = vmul.f32 -1.442695, %v52_v34  ;;  %vm3093_vm7 = vcmp.eq.f32.partialorder %v845_v21, 8.507059e+37 }
  0x92   :  { %v765_v29 = vadd.f32 %v3023_v18, %v764_v39  ;;  %v3091_v54 = vadd.f32 1.0, %v2077_v26  ;;  %v2079_v56 = vpop.eup %2078  ;;  %v839_v41 = vmul.f32 %v2075_v30, %v838_v48  ;;  %1762 = vst [vmem:[%s4628_s2 + $0x50] sm:$0xff] %v1641_v51  ;;  %v848_v61 = vor.u32 1.1754944e-38, %v847_v3  ;;  %v1374_v48 = vpop.permute.xlu2 %1373 }
  0x93   :  { %1763 = vst.msk [vmem:[%s4628_s2 + $0x58] sm:$0xff] %vm1752_vm4, %v1642_v52  ;;  %v1916_v35 = vmul.f32 -1.442695, %v51_v42  ;;  %v3118_v57 = vadd.f32 1.0, %v2079_v56  ;;  %v1915_v13 = vmul.f32 -1.442695, %v50_v4 }
  0x94   :  { %v769_v59 = vsel %vm3083_vm5, %v3023_v18, %v765_v29  ;;  %2086 = vrcp.f32 %v3091_v54  ;;  %v840_v62 = vadd.f32 %v2075_v30, %v839_v41  ;;  %v830_v1 = vand.u32 2147483647, %v3091_v54  ;;  %v53_v18 = vld [vmem:[%s4626_s0 + $0x150] sm:$0xff] }
  0x95   :  { %v774_v63 = vsel %vm3015_vm0, %v773_v25, %v769_v59  ;;  %v2081_v5 = vpop.eup %2080  ;;  %2088 = vpow2.f32 %v1917_v55  ;;  %v832_v8 = vand.u32 2147483648, %v3091_v54  ;;  %vm826_vm10 = vweird.f32 %v3091_v54 }
  0x96   :  { %1483 = vperm.xlu0 %1937, %v774_v63   ;;  %v2083_v7 = vpop.eup %2082  ;;  %v844_v36 = vsel %vm3106_vm8, %v2075_v30, %v840_v62  ;;  %2090 = vrcp.f32 %v3118_v57  ;;  %v3136_v2 = vadd.f32 1.0, %v2081_v5  ;;  %vm3138_vm9 = vcmp.eq.f32.partialorder %v830_v1, 8.507059e+37 }
  0x97   :  { %v2085_v10 = vpop.eup %2084  ;;  %v849_v11 = vsel %vm3093_vm7, %v848_v61, %v844_v36  ;;  %v3142_v49 = vadd.f32 1.0, %v2083_v7  ;;  %2092 = vpow2.f32 %v1916_v35  ;;  %v3146_v17 = vmul.f32 -1.442695, %v55_v6 }
  0x98   :  { %1508 = vperm.xlu2 %1939, %v849_v11   ;;  %v3144_v16 = vadd.f32 1.0, %v2085_v10  ;;  %v815_v20 = vand.u32 2147483647, %v3118_v57  ;;  %v817_v53 = vand.u32 2147483648, %v3118_v57  ;;  %2094 = vrcp.f32 %v3136_v2 }
  0x99   :  { %v3154_v21 = vmul.f32 -1.442695, %v54_v9  ;;  %v833_v23 = vor.u32 1.1754944e-38, %v832_v8  ;;  %v890_v50 = vand.u32 2147483647, %v3136_v2  ;;  %v892_v15 = vand.u32 2147483648, %v3136_v2 }
  0x9a   :  { %v2087_v47 = vpop.eup %2086  ;;  %vm811_vm11 = vweird.f32 %v3118_v57  ;;  %2096 = vrcp.f32 %v3142_v49  ;;  %v877_v25 = vand.u32 2147483648, %v3142_v49  ;;  %v3162_v0 = vmul.f32 -1.442695, %v53_v18 }
  0x9b   :  { %v822_v22 = vmul.f32 %v2087_v47, %v3091_v54  ;;  %v2089_v24 = vpop.eup %2088  ;;  %vm827_vm12 = vweird.f32 %v2087_v47  ;;  %v875_v30 = vand.u32 2147483647, %v3142_v49  ;;  %2098 = vrcp.f32 %v3144_v16 }
  0x9c   :  { %v2091_v27 = vpop.eup %2090  ;;  %vm3167_vm13 = vcmp.eq.f32.partialorder %v815_v20, 8.507059e+37  ;;  %v818_v31 = vor.u32 1.1754944e-38, %v817_v53  ;;  %vm886_vm14 = vweird.f32 %v3136_v2  ;;  %vm3172_vm15 = vcmp.eq.f32.partialorder %v890_v50, 8.507059e+37  ;;  %vm3179_vm6 = vmor %vm826_vm10, %vm827_vm12  ;;  %v1228_v53 = vld [vmem:[%s4627_s1 + $0x88] sm:$0xff] }
  0x9d   :  { %v823_v28 = vsub.f32 1.0, %v822_v22  ;;  %v807_v14 = vmul.f32 %v2091_v27, %v3118_v57  ;;  %v2093_v32 = vpop.eup %2092  ;;  %v893_v3 = vor.u32 1.1754944e-38, %v892_v15  ;;  %vm871_vm0 = vweird.f32 %v3142_v49 }
  0x9e   :  { %v2095_v38 = vpop.eup %2094  ;;  %vm812_vm1 = vweird.f32 %v2091_v27  ;;  %v3183_v40 = vor.u32 1.1754944e-38, %v877_v25  ;;  %v3185_v43 = vadd.f32 1.0, %v2089_v24  ;;  %vm3188_vm2 = vcmp.eq.f32.partialorder %v875_v30, 8.507059e+37 }
  0x9f   :  { %v824_v33 = vmul.f32 %v2087_v47, %v823_v28  ;;  %v808_v39 = vsub.f32 1.0, %v807_v14  ;;  %v882_v45 = vmul.f32 %v2095_v38, %v3136_v2  ;;  %v860_v46 = vand.u32 2147483647, %v3144_v16  ;;  %vm3202_vm3 = vmor %vm811_vm11, %vm812_vm1 }
  0xa0   :  { %2100 = vpow2.f32 %v1915_v13  ;;  %v2097_v51 = vpop.eup %2096  ;;  %v862_v42 = vand.u32 2147483648, %v3144_v16  ;;  %v3195_v29 = vadd.f32 1.0, %v2093_v32  ;;  %vm887_vm5 = vweird.f32 %v2095_v38 }
  0xa1   :  { %v825_v44 = vadd.f32 %v2087_v47, %v824_v33  ;;  %v809_v52 = vmul.f32 %v2091_v27, %v808_v39  ;;  %2102 = vrcp.f32 %v3185_v43  ;;  %v2099_v54 = vpop.eup %2098  ;;  %v883_v41 = vsub.f32 1.0, %v882_v45  ;;  %vm3219_vm11 = vmor %vm886_vm14, %vm887_vm5 }
  0xa2   :  { %v867_v58 = vmul.f32 %v2097_v51, %v3142_v49  ;;  %v852_v61 = vmul.f32 %v2099_v54, %v3144_v16  ;;  %vm856_vm7 = vweird.f32 %v3144_v16  ;;  %vm872_vm8 = vweird.f32 %v2097_v51 }
  0xa3   :  { %v829_v55 = vsel %vm3179_vm6, %v2087_v47, %v825_v44  ;;  %v810_v60 = vadd.f32 %v2091_v27, %v809_v52  ;;  %v884_v35 = vmul.f32 %v2095_v38, %v883_v41  ;;  %vm3211_vm10 = vcmp.eq.f32.partialorder %v860_v46, 8.507059e+37  ;;  %vm3230_vm12 = vmor %vm871_vm0, %vm872_vm8  ;;  %v1344_v44 = vpop.permute.xlu1 %1343  ;;  %v1334_v52 = vpop.permute.xlu0 %1333 }
  0xa4   :  { %v834_v59 = vsel %vm3138_vm9, %v833_v23, %v829_v55  ;;  %v868_v63 = vsub.f32 1.0, %v867_v58  ;;  %v853_v4 = vsub.f32 1.0, %v852_v61  ;;  %vm857_vm9 = vweird.f32 %v2099_v54 }
  0xa5   :  { %1503 = vperm.xlu1 %1938, %v834_v59   ;;  %v814_v1 = vsel %vm3202_vm3, %v2091_v27, %v810_v60  ;;  %2104 = vrcp.f32 %v3195_v29  ;;  %v885_v7 = vadd.f32 %v2095_v38, %v884_v35  ;;  %v863_v8 = vor.u32 1.1754944e-38, %v862_v42  ;;  %v1389_v27 = vpop.permute.xlu2 %1388  ;;  %v58_v42 = vld [vmem:[%s4626_s0 + $0x178] sm:$0xff] }
  0xa6   :  { %v2101_v5 = vpop.eup %2100  ;;  %v819_v6 = vsel %vm3167_vm13, %v818_v31, %v814_v1  ;;  %v869_v36 = vmul.f32 %v2097_v51, %v868_v63  ;;  %v854_v11 = vmul.f32 %v2099_v54, %v853_v4  ;;  %vm931_vm14 = vweird.f32 %v3185_v43  ;;  %vm3245_vm13 = vmor %vm856_vm7, %vm857_vm9  ;;  %v1233_v31 = vld [vmem:[%s4627_s1 + $0xb0] sm:$0xff] }
  0xa7   :  { %v3226_v9 = vpop.eup %2102  ;;  %1498 = vperm.xlu0 %1937, %v819_v6   ;;  %v935_v2 = vand.u32 2147483647, %v3185_v43  ;;  %v937_v13 = vand.u32 2147483648, %v3185_v43  ;;  %v889_v18 = vsel %vm3219_vm11, %v2095_v38, %v885_v7  ;;  %vm916_vm0 = vweird.f32 %v3195_v29 }
  0xa8   :  { %v870_v47 = vadd.f32 %v2097_v51, %v869_v36  ;;  %v927_v20 = vmul.f32 %v3226_v9, %v3185_v43  ;;  %v894_v22 = vsel %vm3172_vm15, %v893_v3, %v889_v18  ;;  %v855_v23 = vadd.f32 %v2099_v54, %v854_v11  ;;  %v1216_v43 = vld [vmem:[%s4627_s1 + $0x28] sm:$0xff] }
  0xa9   :  { %vm932_vm6 = vweird.f32 %v3226_v9  ;;  %v922_v16 = vand.u32 2147483648, %v3195_v29  ;;  %1523 = vperm.xlu2 %1939, %v894_v22   ;;  %v3261_v24 = vadd.f32 1.0, %v2101_v5  ;;  %v1647_v25 = vmul.f32 %v1374_v48, %v1227_v12 }
  0xaa   :  { %v874_v50 = vsel %vm3230_vm12, %v2097_v51, %v870_v47  ;;  %v928_v15 = vsub.f32 1.0, %v927_v20  ;;  %v859_v14 = vsel %vm3245_vm13, %v2099_v54, %v855_v23  ;;  %v1648_v19 = vmul.f32 %v1374_v48, %v1228_v53  ;;  %vm3293_vm1 = vmor %vm931_vm14, %vm932_vm6  ;;  %v1211_v48 = vld [vmem:[%s4627_s1] sm:$0xff]  ;;  %v1212_v51 = vld [vmem:[%s4627_s1 + $0x8] sm:$0xff] }
  0xab   :  { %v3263_v28 = vpop.eup %2104  ;;  %v879_v30 = vsel %vm3188_vm2, %v3183_v40, %v874_v50  ;;  %2106 = vpow2.f32 %v3146_v17  ;;  %v864_v32 = vsel %vm3211_vm10, %v863_v8, %v859_v14  ;;  %vm3277_vm15 = vcmp.eq.f32.partialorder %v935_v2, 8.507059e+37  ;;  %1768 = vst [vmem:[%s4628_s2 + $0x80] sm:$0xff] %v1647_v25  ;;  %v1234_v17 = vld [vmem:[%s4627_s1 + $0xb8] sm:$0xff]  ;;  %v1215_v40 = vld [vmem:[%s4627_s1 + $0x20] sm:$0xff]  ;;  %v61_v20 = vld [vmem:[%s4626_s0 + $0x190] sm:$0xff]  ;;  %v1339_v35 = vpop.permute.xlu0 %1338 }
  0xac   :  { %v929_v33 = vmul.f32 %v3226_v9, %v928_v15  ;;  %v912_v3 = vmul.f32 %v3263_v28, %v3195_v29  ;;  %v938_v34 = vor.u32 1.1754944e-38, %v937_v13  ;;  %vm917_vm2 = vweird.f32 %v3263_v28  ;;  %1769 = vst.msk [vmem:[%s4628_s2 + $0x88] sm:$0xff] %vm1752_vm4, %v1648_v19  ;;  %v1239_v2 = vld [vmem:[%s4627_s1 + $0xe0] sm:$0xff] }
  0xad   :  { %1518 = vperm.xlu1 %1938, %v879_v30   ;;  %v920_v39 = vand.u32 2147483647, %v3195_v29  ;;  %2108 = vrcp.f32 %v3261_v24  ;;  %v1653_v46 = vmul.f32 %v1389_v27, %v1233_v31  ;;  %v923_v54 = vor.u32 1.1754944e-38, %v922_v16  ;;  %vm3341_vm3 = vmor %vm916_vm0, %vm917_vm2  ;;  %v1404_v13 = vpop.permute.xlu2 %1403 }
  0xae   :  { %v930_v45 = vadd.f32 %v3226_v9, %v929_v33  ;;  %v913_v26 = vsub.f32 1.0, %v912_v3  ;;  %2110 = vpow2.f32 %v3154_v21  ;;  %v1654_v55 = vmul.f32 %v1389_v27, %v1234_v17  ;;  %v57_v21 = vld [vmem:[%s4626_s0 + $0x170] sm:$0xff] }
  0xaf   :  { %1513 = vperm.xlu0 %1937, %v864_v32   ;;  %2112 = vpow2.f32 %v3162_v0  ;;  %1774 = vst [vmem:[%s4628_s2 + $0xb0] sm:$0xff] %v1653_v46  ;;  %v1635_v58 = vmul.f32 %v1344_v44, %v1215_v40  ;;  %v1636_v59 = vmul.f32 %v1344_v44, %v1216_v43  ;;  %v56_v0 = vld [vmem:[%s4626_s0 + $0x168] sm:$0xff]  ;;  %v1631_v63 = vmul.f32 %v1334_v52, %v1211_v48  ;;  %v1349_v40 = vpop.permute.xlu1 %1348 }
  0xb0   :  { %v934_v56 = vsel %vm3293_vm1, %v3226_v9, %v930_v45  ;;  %v914_v41 = vmul.f32 %v3263_v28, %v913_v26  ;;  %1775 = vst.msk [vmem:[%s4628_s2 + $0xb8] sm:$0xff] %vm1752_vm4, %v1654_v55  ;;  %v1632_v62 = vmul.f32 %v1334_v52, %v1212_v51  ;;  %v1923_v1 = vmul.f32 -1.442695, %v58_v42  ;;  %v1225_v51 = vld [vmem:[%s4627_s1 + $0x70] sm:$0xff] }
  0xb1   :  { %v2107_v60 = vpop.eup %2106  ;;  %v939_v61 = vsel %vm3277_vm15, %v938_v34, %v934_v56  ;;  %vm3350_vm5 = vcmp.eq.f32.partialorder %v920_v39, 8.507059e+37  ;;  %1756 = vst [vmem:[%s4628_s2 + $0x20] sm:$0xff] %v1635_v58  ;;  %v1922_v5 = vmul.f32 -1.442695, %v57_v21  ;;  %v905_v7 = vand.u32 2147483647, %v3261_v24 }
  0xb2   :  { %1538 = vperm.xlu2 %1939, %v939_v61   ;;  %v915_v57 = vadd.f32 %v3263_v28, %v914_v41  ;;  %v3354_v29 = vadd.f32 1.0, %v2107_v60  ;;  %v907_v36 = vand.u32 2147483648, %v3261_v24  ;;  %1757 = vst.msk [vmem:[%s4628_s2 + $0x28] sm:$0xff] %vm1752_vm4, %v1636_v59  ;;  %2114 = vpow2.f32 %v1923_v1  ;;  %v1240_v34 = vld [vmem:[%s4627_s1 + $0xe8] sm:$0xff]  ;;  %v1217_v39 = vld [vmem:[%s4627_s1 + $0x30] sm:$0xff] }
  0xb3   :  { %v2109_v6 = vpop.eup %2108  ;;  %v1921_v8 = vmul.f32 -1.442695, %v56_v0  ;;  %vm901_vm7 = vweird.f32 %v3261_v24  ;;  %1751 = vst [vmem:[%s4628_s2] sm:$0xff] %v1631_v63  ;;  %vm3392_vm10 = vcmp.eq.f32.partialorder %v905_v7, 8.507059e+37  ;;  %v1659_v15 = vmul.f32 %v1404_v13, %v1239_v2  ;;  %v1213_v2 = vld [vmem:[%s4627_s1 + $0x10] sm:$0xff] }
  0xb4   :  { %v2111_v9 = vpop.eup %2110  ;;  %v919_v10 = vsel %vm3341_vm3, %v3263_v28, %v915_v57  ;;  %v897_v11 = vmul.f32 %v2109_v6, %v3261_v24  ;;  %2116 = vrcp.f32 %v3354_v29  ;;  %vm902_vm8 = vweird.f32 %v2109_v6  ;;  %1753 = vst.msk [vmem:[%s4628_s2 + $0x8] sm:$0xff] %vm1752_vm4, %v1632_v62 }
  0xb5   :  { %v2113_v12 = vpop.eup %2112  ;;  %v924_v18 = vsel %vm3350_vm5, %v923_v54, %v919_v10  ;;  %v980_v47 = vand.u32 2147483647, %v3354_v29  ;;  %v982_v49 = vand.u32 2147483648, %v3354_v29  ;;  %v3388_v22 = vadd.f32 1.0, %v2111_v9  ;;  %vm3403_vm9 = vmor %vm901_vm7, %vm902_vm8  ;;  %1780 = vst [vmem:[%s4628_s2 + $0xe0] sm:$0xff] %v1659_v15 }
  0xb6   :  { %1533 = vperm.xlu1 %1938, %v924_v18   ;;  %v898_v53 = vsub.f32 1.0, %v897_v11  ;;  %v3390_v23 = vadd.f32 1.0, %v2113_v12  ;;  %2118 = vpow2.f32 %v1922_v5  ;;  %v908_v50 = vor.u32 1.1754944e-38, %v907_v36  ;;  %v1218_v11 = vld [vmem:[%s4627_s1 + $0x38] sm:$0xff] }
  0xb7   :  { %2120 = vpow2.f32 %v1921_v8  ;;  %vm976_vm11 = vweird.f32 %v3354_v29  ;;  %v3398_v27 = vmul.f32 -1.442695, %v61_v20  ;;  %vm3407_vm12 = vcmp.eq.f32.partialorder %v980_v47, 8.507059e+37 }
  0xb8   :  { %v899_v25 = vmul.f32 %v2109_v6, %v898_v53  ;;  %2122 = vrcp.f32 %v3388_v22  ;;  %v2115_v28 = vpop.eup %2114  ;;  %v965_v19 = vand.u32 2147483647, %v3388_v22  ;;  %v967_v31 = vand.u32 2147483648, %v3388_v22 }
  0xb9   :  { %2124 = vrcp.f32 %v3390_v23  ;;  %v983_v33 = vor.u32 1.1754944e-38, %v982_v49  ;;  %vm961_vm14 = vweird.f32 %v3388_v22  ;;  %v3418_v37 = vadd.f32 1.0, %v2115_v28 }
  0xba   :  { %v2117_v32 = vpop.eup %2116  ;;  %v900_v24 = vadd.f32 %v2109_v6, %v899_v25  ;;  %vm946_vm13 = vweird.f32 %v3390_v23  ;;  %v950_v17 = vand.u32 2147483647, %v3390_v23  ;;  %v952_v38 = vand.u32 2147483648, %v3390_v23 }
  0xbb   :  { %v972_v3 = vmul.f32 %v2117_v32, %v3354_v29  ;;  %vm977_vm0 = vweird.f32 %v2117_v32  ;;  %v3432_v45 = vor.u32 1.1754944e-38, %v967_v31  ;;  %2126 = vrcp.f32 %v3418_v37 }
  0xbc   :  { %v2119_v43 = vpop.eup %2118  ;;  %v904_v44 = vsel %vm3403_vm9, %v2109_v6, %v900_v24  ;;  %vm3437_vm6 = vcmp.eq.f32.partialorder %v965_v19, 8.507059e+37  ;;  %v1025_v52 = vand.u32 2147483647, %v3418_v37  ;;  %v1027_v42 = vand.u32 2147483648, %v3418_v37  ;;  %vm3457_vm1 = vmor %vm976_vm11, %vm977_vm0  ;;  %v60_v24 = vld [vmem:[%s4626_s0 + $0x188] sm:$0xff] }
  0xbd   :  { %v2121_v26 = vpop.eup %2120  ;;  %v909_v46 = vsel %vm3392_vm10, %v908_v50, %v904_v44  ;;  %v973_v48 = vsub.f32 1.0, %v972_v3  ;;  %v3443_v55 = vadd.f32 1.0, %v2119_v43  ;;  %v1660_v56 = vmul.f32 %v1404_v13, %v1240_v34  ;;  %v1214_v13 = vld [vmem:[%s4627_s1 + $0x18] sm:$0xff]  ;;  %v1419_v43 = vpop.permute.xlu2 %1418 }
  0xbe   :  { %v2123_v54 = vpop.eup %2122  ;;  %1528 = vperm.xlu0 %1937, %v909_v46   ;;  %v3445_v21 = vadd.f32 1.0, %v2121_v26  ;;  %v1637_v41 = vmul.f32 %v1349_v40, %v1217_v39  ;;  %vm3450_vm15 = vcmp.eq.f32.partialorder %v950_v17, 8.507059e+37  ;;  %v953_v61 = vor.u32 1.1754944e-38, %v952_v38  ;;  %v1369_v44 = vpop.permute.xlu1 %1368 }
  0xbf   :  { %v3447_v58 = vpop.eup %2124  ;;  %v974_v59 = vmul.f32 %v2117_v32, %v973_v48  ;;  %v957_v0 = vmul.f32 %v2123_v54, %v3388_v22  ;;  %vm962_vm2 = vweird.f32 %v2123_v54  ;;  %vm1021_vm3 = vweird.f32 %v3418_v37  ;;  %1781 = vst.msk [vmem:[%s4628_s2 + $0xe8] sm:$0xff] %vm1752_vm4, %v1660_v56  ;;  %v1246_v48 = vld [vmem:[%s4627_s1 + $0x118] sm:$0xff] }
  0xc0   :  { %v942_v62 = vmul.f32 %v3447_v58, %v3390_v23  ;;  %2128 = vrcp.f32 %v3443_v55  ;;  %vm947_vm5 = vweird.f32 %v3447_v58  ;;  %vm3470_vm7 = vcmp.eq.f32.partialorder %v1025_v52, 8.507059e+37  ;;  %1758 = vst [vmem:[%s4628_s2 + $0x30] sm:$0xff] %v1637_v41  ;;  %vm3503_vm10 = vmor %vm961_vm14, %vm962_vm2  ;;  %v1364_v52 = vpop.permute.xlu0 %1363  ;;  %v1226_v41 = vld [vmem:[%s4627_s1 + $0x78] sm:$0xff] }
  0xc1   :  { %v975_v1 = vadd.f32 %v2117_v32, %v974_v59  ;;  %v958_v57 = vsub.f32 1.0, %v957_v0  ;;  %v1010_v29 = vand.u32 2147483647, %v3443_v55  ;;  %v3478_v5 = vpop.eup %2126  ;;  %v3480_v7 = vor.u32 1.1754944e-38, %v1027_v42  ;;  %v64_v42 = vld [vmem:[%s4626_s0 + $0x1a8] sm:$0xff] }
  0xc2   :  { %v943_v6 = vsub.f32 1.0, %v942_v62  ;;  %v1012_v36 = vand.u32 2147483648, %v3443_v55  ;;  %2130 = vrcp.f32 %v3445_v21  ;;  %v1017_v10 = vmul.f32 %v3478_v5, %v3418_v37 }
  0xc3   :  { %v979_v8 = vsel %vm3457_vm1, %v2117_v32, %v975_v1  ;;  %v959_v9 = vmul.f32 %v2123_v54, %v958_v57  ;;  %vm1006_vm8 = vweird.f32 %v3443_v55  ;;  %vm1022_vm11 = vweird.f32 %v3478_v5 }
  0xc4   :  { %v984_v12 = vsel %vm3407_vm12, %v983_v33, %v979_v8  ;;  %v944_v47 = vmul.f32 %v3447_v58, %v943_v6  ;;  %vm991_vm9 = vweird.f32 %v3445_v21  ;;  %vm3514_vm12 = vmor %vm946_vm13, %vm947_vm5  ;;  %v1018_v53 = vsub.f32 1.0, %v1017_v10  ;;  %v59_v33 = vld [vmem:[%s4626_s0 + $0x180] sm:$0xff] }
  0xc5   :  { %1553 = vperm.xlu2 %1939, %v984_v12   ;;  %v960_v49 = vadd.f32 %v2123_v54, %v959_v9  ;;  %vm3518_vm14 = vcmp.eq.f32.partialorder %v1010_v29, 8.507059e+37  ;;  %v3522_v16 = vor.u32 1.1754944e-38, %v1012_v36  ;;  %v997_v50 = vand.u32 2147483648, %v3445_v21  ;;  %vm3552_vm13 = vmor %vm1021_vm3, %vm1022_vm11  ;;  %v62_v29 = vld [vmem:[%s4626_s0 + $0x198] sm:$0xff]  ;;  %v1434_v20 = vpop.permute.xlu2 %1433 }
  0xc6   :  { %v3525_v15 = vpop.eup %2128  ;;  %v945_v25 = vadd.f32 %v3447_v58, %v944_v47  ;;  %v1638_v28 = vmul.f32 %v1349_v40, %v1218_v11  ;;  %v1633_v30 = vmul.f32 %v1339_v35, %v1213_v2  ;;  %v1634_v23 = vmul.f32 %v1339_v35, %v1214_v13  ;;  %v1245_v40 = vld [vmem:[%s4627_s1 + $0x110] sm:$0xff]  ;;  %v63_v35 = vld [vmem:[%s4626_s0 + $0x1a0] sm:$0xff]  ;;  %v1384_v22 = vpop.permute.xlu1 %1383 }
  0xc7   :  { %v964_v14 = vsel %vm3503_vm10, %v2123_v54, %v960_v49  ;;  %v1019_v19 = vmul.f32 %v3478_v5, %v1018_v53  ;;  %v1002_v31 = vmul.f32 %v3525_v15, %v3443_v55  ;;  %v995_v32 = vand.u32 2147483647, %v3445_v21  ;;  %v67_v13 = vld [vmem:[%s4626_s0 + $0x1c0] sm:$0xff]  ;;  %v1252_v49 = vld [vmem:[%s4627_s1 + $0x148] sm:$0xff] }
  0xc8   :  { %v3540_v3 = vpop.eup %2130  ;;  %v969_v17 = vsel %vm3437_vm6, %v3432_v45, %v964_v14  ;;  %v949_v38 = vsel %vm3514_vm12, %v3447_v58, %v945_v25  ;;  %vm1007_vm0 = vweird.f32 %v3525_v15  ;;  %v3557_v39 = vor.u32 1.1754944e-38, %v997_v50  ;;  %1759 = vst.msk [vmem:[%s4628_s2 + $0x38] sm:$0xff] %vm1752_vm4, %v1638_v28  ;;  %v1251_v47 = vld [vmem:[%s4627_s1 + $0x140] sm:$0xff]  ;;  %v1232_v25 = vld [vmem:[%s4627_s1 + $0xa8] sm:$0xff]  ;;  %v1229_v28 = vld [vmem:[%s4627_s1 + $0x90] sm:$0xff] }
  0xc9   :  { %1548 = vperm.xlu1 %1938, %v969_v17   ;;  %v954_v37 = vsel %vm3450_vm15, %v953_v61, %v949_v38  ;;  %v1020_v45 = vadd.f32 %v3478_v5, %v1019_v19  ;;  %v1003_v26 = vsub.f32 1.0, %v1002_v31  ;;  %v987_v46 = vmul.f32 %v3540_v3, %v3445_v21  ;;  %1754 = vst [vmem:[%s4628_s2 + $0x10] sm:$0xff] %v1633_v30  ;;  %v1223_v61 = vld [vmem:[%s4627_s1 + $0x60] sm:$0xff]  ;;  %vm3612_vm15 = vmor %vm1006_vm8, %vm1007_vm0  ;;  %v1379_v30 = vpop.permute.xlu0 %1378 }
  0xca   :  { %1543 = vperm.xlu0 %1937, %v954_v37   ;;  %vm992_vm6 = vweird.f32 %v3540_v3  ;;  %1755 = vst.msk [vmem:[%s4628_s2 + $0x18] sm:$0xff] %vm1752_vm4, %v1634_v23  ;;  %2132 = vpow2.f32 %v3398_v27  ;;  %v1925_v54 = vmul.f32 -1.442695, %v60_v24  ;;  %v1924_v56 = vmul.f32 -1.442695, %v59_v33  ;;  %v1224_v27 = vld [vmem:[%s4627_s1 + $0x68] sm:$0xff] }
  0xcb   :  { %v1024_v58 = vsel %vm3552_vm13, %v3478_v5, %v1020_v45  ;;  %v1004_v59 = vmul.f32 %v3525_v15, %v1003_v26  ;;  %v988_v0 = vsub.f32 1.0, %v987_v46  ;;  %v1665_v60 = vmul.f32 %v1419_v43, %v1245_v40  ;;  %vm3628_vm1 = vmor %vm991_vm9, %vm992_vm6  ;;  %v1231_v53 = vld [vmem:[%s4627_s1 + $0xa0] sm:$0xff] }
  0xcc   :  { %v1029_v63 = vsel %vm3470_vm7, %v3480_v7, %v1024_v58  ;;  %2134 = vpow2.f32 %v1925_v54  ;;  %v1666_v1 = vmul.f32 %v1419_v43, %v1246_v48  ;;  %v1645_v57 = vmul.f32 %v1369_v44, %v1225_v51 }
  0xcd   :  { %1568 = vperm.xlu2 %1939, %v1029_v63   ;;  %v1005_v5 = vadd.f32 %v3525_v15, %v1004_v59  ;;  %v989_v4 = vmul.f32 %v3540_v3, %v988_v0  ;;  %2136 = vpow2.f32 %v1924_v56  ;;  %1786 = vst [vmem:[%s4628_s2 + $0x110] sm:$0xff] %v1665_v60  ;;  %v1646_v55 = vmul.f32 %v1369_v44, %v1226_v41 }
  0xce   :  { %1787 = vst.msk [vmem:[%s4628_s2 + $0x118] sm:$0xff] %vm1752_vm4, %v1666_v1  ;;  %v1643_v7 = vmul.f32 %v1364_v52, %v1223_v61  ;;  %v1644_v36 = vmul.f32 %v1364_v52, %v1224_v27  ;;  %v1929_v8 = vmul.f32 -1.442695, %v64_v42  ;;  %v1928_v9 = vmul.f32 -1.442695, %v63_v35 }
  0xcf   :  { %v1009_v10 = vsel %vm3612_vm15, %v3525_v15, %v1005_v5  ;;  %v990_v11 = vadd.f32 %v3540_v3, %v989_v4  ;;  %vm3640_vm2 = vcmp.eq.f32.partialorder %v995_v32, 8.507059e+37  ;;  %1766 = vst [vmem:[%s4628_s2 + $0x70] sm:$0xff] %v1645_v57  ;;  %v1927_v2 = vmul.f32 -1.442695, %v62_v29  ;;  %v1230_v32 = vld [vmem:[%s4627_s1 + $0x98] sm:$0xff] }
  0xd0   :  { %v2133_v12 = vpop.eup %2132  ;;  %v1014_v18 = vsel %vm3518_vm14, %v3522_v16, %v1009_v10  ;;  %1767 = vst.msk [vmem:[%s4628_s2 + $0x78] sm:$0xff] %vm1752_vm4, %v1646_v55  ;;  %2138 = vpow2.f32 %v1929_v8  ;;  %v1671_v15 = vmul.f32 %v1434_v20, %v1251_v47  ;;  %v1672_v19 = vmul.f32 %v1434_v20, %v1252_v49 }
  0xd1   :  { %1563 = vperm.xlu1 %1938, %v1014_v18   ;;  %v994_v16 = vsel %vm3628_vm1, %v3540_v3, %v990_v11  ;;  %v3669_v50 = vadd.f32 1.0, %v2133_v12  ;;  %1764 = vst [vmem:[%s4628_s2 + $0x60] sm:$0xff] %v1643_v7  ;;  %2140 = vpow2.f32 %v1928_v9  ;;  %v1651_v31 = vmul.f32 %v1384_v22, %v1231_v53  ;;  %v66_v3 = vld [vmem:[%s4626_s0 + $0x1b8] sm:$0xff]  ;;  %v1394_v27 = vpop.permute.xlu0 %1393 }
  0xd2   :  { %v2135_v23 = vpop.eup %2134  ;;  %v999_v14 = vsel %vm3640_vm2, %v3557_v39, %v994_v16  ;;  %1765 = vst.msk [vmem:[%s4628_s2 + $0x68] sm:$0xff] %vm1752_vm4, %v1644_v36  ;;  %2142 = vpow2.f32 %v1927_v2  ;;  %v1932_v33 = vmul.f32 -1.442695, %v67_v13  ;;  %v1652_v34 = vmul.f32 %v1384_v22, %v1232_v25 }
  0xd3   :  { %v2137_v24 = vpop.eup %2136  ;;  %1558 = vperm.xlu0 %1937, %v999_v14   ;;  %2144 = vrcp.f32 %v3669_v50  ;;  %1792 = vst [vmem:[%s4628_s2 + $0x140] sm:$0xff] %v1671_v15  ;;  %v3697_v17 = vadd.f32 1.0, %v2135_v23  ;;  %v1649_v39 = vmul.f32 %v1379_v30, %v1229_v28  ;;  %v1070_v40 = vand.u32 2147483647, %v3669_v50 }
  0xd4   :  { %v3699_v38 = vadd.f32 1.0, %v2137_v24  ;;  %1793 = vst.msk [vmem:[%s4628_s2 + $0x148] sm:$0xff] %vm1752_vm4, %v1672_v19  ;;  %v1072_v43 = vand.u32 2147483648, %v3669_v50  ;;  %v1650_v44 = vmul.f32 %v1379_v30, %v1230_v32  ;;  %v1931_v26 = vmul.f32 -1.442695, %v66_v3 }
  0xd5   :  { %1772 = vst [vmem:[%s4628_s2 + $0xa0] sm:$0xff] %v1651_v31  ;;  %2146 = vrcp.f32 %v3697_v17  ;;  %v1057_v45 = vand.u32 2147483648, %v3697_v17  ;;  %vm1066_vm3 = vweird.f32 %v3669_v50  ;;  %v1055_v48 = vand.u32 2147483647, %v3697_v17 }
  0xd6   :  { %v2139_v37 = vpop.eup %2138  ;;  %1773 = vst.msk [vmem:[%s4628_s2 + $0xa8] sm:$0xff] %vm1752_vm4, %v1652_v34  ;;  %2148 = vrcp.f32 %v3699_v38  ;;  %v1042_v51 = vand.u32 2147483648, %v3699_v38  ;;  %v1040_v42 = vand.u32 2147483647, %v3699_v38  ;;  %vm3732_vm5 = vcmp.eq.f32.partialorder %v1070_v40, 8.507059e+37 }
  0xd7   :  { %v2141_v46 = vpop.eup %2140  ;;  %1770 = vst [vmem:[%s4628_s2 + $0x90] sm:$0xff] %v1649_v39  ;;  %v3724_v54 = vadd.f32 1.0, %v2139_v37  ;;  %2150 = vpow2.f32 %v1932_v33  ;;  %v1073_v59 = vor.u32 1.1754944e-38, %v1072_v43  ;;  %vm1051_vm7 = vweird.f32 %v3697_v17 }
  0xd8   :  { %v2143_v52 = vpop.eup %2142  ;;  %v3726_v56 = vadd.f32 1.0, %v2141_v46  ;;  %1771 = vst.msk [vmem:[%s4628_s2 + $0x98] sm:$0xff] %vm1752_vm4, %v1650_v44  ;;  %v1058_v61 = vor.u32 1.1754944e-38, %v1057_v45  ;;  %vm1036_vm8 = vweird.f32 %v3699_v38  ;;  %vm3742_vm10 = vcmp.eq.f32.partialorder %v1055_v48, 8.507059e+37  ;;  %v65_v45 = vld [vmem:[%s4626_s0 + $0x1b0] sm:$0xff] }
  0xd9   :  { %v2145_v41 = vpop.eup %2144  ;;  %v3737_v0 = vadd.f32 1.0, %v2143_v52  ;;  %2152 = vrcp.f32 %v3724_v54  ;;  %v3746_v35 = vor.u32 1.1754944e-38, %v1042_v51  ;;  %v1115_v63 = vand.u32 2147483647, %v3724_v54 }
  0xda   :  { %v1062_v60 = vmul.f32 %v2145_v41, %v3669_v50  ;;  %v1117_v62 = vand.u32 2147483648, %v3724_v54  ;;  %2154 = vrcp.f32 %v3726_v56  ;;  %vm1067_vm11 = vweird.f32 %v2145_v41 }
  0xdb   :  { %v2147_v1 = vpop.eup %2146  ;;  %vm3751_vm9 = vcmp.eq.f32.partialorder %v1040_v42, 8.507059e+37  ;;  %v1102_v5 = vand.u32 2147483648, %v3726_v56  ;;  %2156 = vrcp.f32 %v3737_v0  ;;  %vm1111_vm12 = vweird.f32 %v3724_v54  ;;  %vm3764_vm0 = vmor %vm1066_vm3, %vm1067_vm11  ;;  %v1257_v42 = vld [vmem:[%s4627_s1 + $0x170] sm:$0xff] }
  0xdc   :  { %v1063_v57 = vsub.f32 1.0, %v1062_v60  ;;  %v2149_v4 = vpop.eup %2148  ;;  %v1047_v55 = vmul.f32 %v2147_v1, %v3697_v17  ;;  %v1100_v6 = vand.u32 2147483647, %v3726_v56  ;;  %2158 = vpow2.f32 %v1931_v26 }
  0xdd   :  { %v2151_v7 = vpop.eup %2150  ;;  %vm1052_vm14 = vweird.f32 %v2147_v1  ;;  %v1032_v8 = vmul.f32 %v2149_v4, %v3699_v38  ;;  %vm1096_vm13 = vweird.f32 %v3726_v56  ;;  %vm1037_vm6 = vweird.f32 %v2149_v4 }
  0xde   :  { %v1064_v36 = vmul.f32 %v2145_v41, %v1063_v57  ;;  %v1048_v10 = vsub.f32 1.0, %v1047_v55  ;;  %vm3768_vm15 = vcmp.eq.f32.partialorder %v1115_v63, 8.507059e+37  ;;  %v1118_v21 = vor.u32 1.1754944e-38, %v1117_v62  ;;  %vm3792_vm3 = vmor %vm1051_vm7, %vm1052_vm14 }
  0xdf   :  { %v2153_v2 = vpop.eup %2152  ;;  %v1033_v12 = vsub.f32 1.0, %v1032_v8  ;;  %v3772_v18 = vor.u32 1.1754944e-38, %v1102_v5  ;;  %vm1081_vm1 = vweird.f32 %v3737_v0  ;;  %vm3778_vm2 = vcmp.eq.f32.partialorder %v1100_v6, 8.507059e+37  ;;  %v1258_v5 = vld [vmem:[%s4627_s1 + $0x178] sm:$0xff] }
  0xe0   :  { %v1065_v13 = vadd.f32 %v2145_v41, %v1064_v36  ;;  %v3775_v47 = vpop.eup %2154  ;;  %v1049_v49 = vmul.f32 %v2147_v1, %v1048_v10  ;;  %v1107_v20 = vmul.f32 %v2153_v2, %v3724_v54  ;;  %v1087_v22 = vand.u32 2147483648, %v3737_v0  ;;  %v1449_v54 = vpop.permute.xlu2 %1448  ;;  %v1235_v36 = vld [vmem:[%s4627_s1 + $0xc0] sm:$0xff]  ;;  %v1250_v10 = vld [vmem:[%s4627_s1 + $0x138] sm:$0xff] }
  0xe1   :  { %v3783_v16 = vadd.f32 1.0, %v2151_v7  ;;  %v3785_v50 = vpop.eup %2156  ;;  %v1034_v28 = vmul.f32 %v2149_v4, %v1033_v12  ;;  %vm1112_vm11 = vweird.f32 %v2153_v2  ;;  %v1092_v30 = vmul.f32 %v3775_v47, %v3726_v56  ;;  %v1238_v7 = vld [vmem:[%s4627_s1 + $0xd8] sm:$0xff]  ;;  %v1269_v56 = vld [vmem:[%s4627_s1 + $0x1d0] sm:$0xff] }
  0xe2   :  { %v1069_v15 = vsel %vm3764_vm0, %v2145_v41, %v1065_v13  ;;  %v2159_v23 = vpop.eup %2158  ;;  %v1050_v19 = vadd.f32 %v2147_v1, %v1049_v49  ;;  %vm3803_vm0 = vmor %vm1036_vm8, %vm1037_vm6  ;;  %v1108_v32 = vsub.f32 1.0, %v1107_v20  ;;  %v1077_v24 = vmul.f32 %v3785_v50, %v3737_v0  ;;  %v1399_v41 = vpop.permute.xlu1 %1398  ;;  %v69_v13 = vld [vmem:[%s4626_s0 + $0x1d0] sm:$0xff]  ;;  %v68_v49 = vld [vmem:[%s4626_s0 + $0x1c8] sm:$0xff] }
  0xe3   :  { %v1074_v14 = vsel %vm3732_vm5, %v1073_v59, %v1069_v15  ;;  %v1035_v33 = vadd.f32 %v2149_v4, %v1034_v28  ;;  %v1093_v3 = vsub.f32 1.0, %v1092_v30  ;;  %vm1097_vm7 = vweird.f32 %v3775_v47  ;;  %vm3821_vm5 = vmor %vm1111_vm12, %vm1112_vm11  ;;  %v1263_v28 = vld [vmem:[%s4627_s1 + $0x1a0] sm:$0xff] }
  0xe4   :  { %1583 = vperm.xlu2 %1939, %v1074_v14   ;;  %vm1082_vm14 = vweird.f32 %v3785_v50  ;;  %v1054_v17 = vsel %vm3792_vm3, %v2147_v1, %v1050_v19  ;;  %v1109_v34 = vmul.f32 %v2153_v2, %v1108_v32  ;;  %v1078_v38 = vsub.f32 1.0, %v1077_v24  ;;  %vm3837_vm8 = vmor %vm1096_vm13, %vm1097_vm7  ;;  %v1264_v32 = vld [vmem:[%s4627_s1 + $0x1a8] sm:$0xff] }
  0xe5   :  { %2160 = vrcp.f32 %v3783_v16  ;;  %v1059_v39 = vsel %vm3742_vm10, %v1058_v61, %v1054_v17  ;;  %v1039_v40 = vsel %vm3803_vm0, %v2149_v4, %v1035_v33  ;;  %v1094_v44 = vmul.f32 %v3775_v47, %v1093_v3  ;;  %vm3850_vm10 = vmor %vm1081_vm1, %vm1082_vm14  ;;  %v1237_v4 = vld [vmem:[%s4627_s1 + $0xd0] sm:$0xff]  ;;  %v1243_v33 = vld [vmem:[%s4627_s1 + $0x100] sm:$0xff]  ;;  %v1409_v17 = vpop.permute.xlu0 %1408 }
  0xe6   :  { %v1085_v37 = vand.u32 2147483647, %v3737_v0  ;;  %1578 = vperm.xlu1 %1938, %v1059_v39   ;;  %v1044_v26 = vsel %vm3751_vm9, %v3746_v35, %v1039_v40  ;;  %v1110_v46 = vadd.f32 %v2153_v2, %v1109_v34  ;;  %v1079_v51 = vmul.f32 %v3785_v50, %v1078_v38  ;;  %v1244_v3 = vld [vmem:[%s4627_s1 + $0x108] sm:$0xff]  ;;  %v1253_v34 = vld [vmem:[%s4627_s1 + $0x150] sm:$0xff] }
  0xe7   :  { %v1088_v52 = vor.u32 1.1754944e-38, %v1087_v22  ;;  %1573 = vperm.xlu0 %1937, %v1044_v26   ;;  %v1095_v58 = vadd.f32 %v3775_v47, %v1094_v44  ;;  %v1160_v59 = vand.u32 2147483647, %v3783_v16  ;;  %v1162_v60 = vand.u32 2147483648, %v3783_v16 }
  0xe8   :  { %v3856_v61 = vadd.f32 1.0, %v2159_v23  ;;  %v1114_v35 = vsel %vm3821_vm5, %v2153_v2, %v1110_v46  ;;  %v1080_v63 = vadd.f32 %v3785_v50, %v1079_v51  ;;  %v1930_v62 = vmul.f32 -1.442695, %v65_v45  ;;  %v70_v2 = vld [vmem:[%s4626_s0 + $0x1d8] sm:$0xff]  ;;  %v1464_v30 = vpop.permute.xlu2 %1463 }
  0xe9   :  { %v1677_v1 = vmul.f32 %v1449_v54, %v1257_v42  ;;  %v1119_v0 = vsel %vm3768_vm15, %v1118_v21, %v1114_v35  ;;  %v1099_v57 = vsel %vm3837_vm8, %v3775_v47, %v1095_v58  ;;  %vm3866_vm9 = vcmp.eq.f32.partialorder %v1085_v37, 8.507059e+37  ;;  %v1236_v21 = vld [vmem:[%s4627_s1 + $0xc8] sm:$0xff]  ;;  %v1242_v45 = vld [vmem:[%s4627_s1 + $0xf8] sm:$0xff]  ;;  %v1249_v35 = vld [vmem:[%s4627_s1 + $0x130] sm:$0xff] }
  0xea   :  { %2162 = vrcp.f32 %v3856_v61  ;;  %v1084_v6 = vsel %vm3850_vm10, %v3785_v50, %v1080_v63  ;;  %vm1156_vm12 = vweird.f32 %v3783_v16  ;;  %v1104_v8 = vsel %vm3778_vm2, %v3772_v18, %v1099_v57  ;;  %v1414_v23 = vpop.permute.xlu1 %1413 }
  0xeb   :  { %v3877_v55 = vpop.eup %2160  ;;  %1798 = vst [vmem:[%s4628_s2 + $0x170] sm:$0xff] %v1677_v1  ;;  %vm3897_vm13 = vcmp.eq.f32.partialorder %v1160_v59, 8.507059e+37  ;;  %v1163_v11 = vor.u32 1.1754944e-38, %v1162_v60  ;;  %v1089_v12 = vsel %vm3866_vm9, %v1088_v52, %v1084_v6  ;;  %2164 = vpow2.f32 %v1930_v62  ;;  %v1282_v62 = vld [vmem:[%s4627_s1 + $0x238] sm:$0xff] }
  0xec   :  { %1598 = vperm.xlu2 %1939, %v1119_v0   ;;  %v1152_v9 = vmul.f32 %v3877_v55, %v3783_v16  ;;  %v1678_v18 = vmul.f32 %v1449_v54, %v1258_v5  ;;  %v1657_v47 = vmul.f32 %v1399_v41, %v1237_v4  ;;  %vm1157_vm6 = vweird.f32 %v3877_v55  ;;  %v1241_v16 = vld [vmem:[%s4627_s1 + $0xf0] sm:$0xff] }
  0xed   :  { %v1658_v53 = vmul.f32 %v1399_v41, %v1238_v7  ;;  %v1655_v22 = vmul.f32 %v1394_v27, %v1235_v36  ;;  %v1656_v50 = vmul.f32 %v1394_v27, %v1236_v21  ;;  %v1935_v15 = vmul.f32 -1.442695, %v70_v2  ;;  %vm3943_vm1 = vmor %vm1156_vm12, %vm1157_vm6  ;;  %v1270_v27 = vld [vmem:[%s4627_s1 + $0x1d8] sm:$0xff]  ;;  %v1424_v6 = vpop.permute.xlu0 %1423 }
  0xee   :  { %v1153_v20 = vsub.f32 1.0, %v1152_v9  ;;  %1593 = vperm.xlu1 %1938, %v1104_v8   ;;  %1799 = vst.msk [vmem:[%s4628_s2 + $0x178] sm:$0xff] %vm1752_vm4, %v1678_v18  ;;  %v1934_v25 = vmul.f32 -1.442695, %v69_v13  ;;  %vm1141_vm15 = vweird.f32 %v3856_v61  ;;  %v1933_v31 = vmul.f32 -1.442695, %v68_v49 }
  0xef   :  { %1588 = vperm.xlu0 %1937, %v1089_v12   ;;  %1778 = vst [vmem:[%s4628_s2 + $0xd0] sm:$0xff] %v1657_v47  ;;  %v1683_v24 = vmul.f32 %v1464_v30, %v1263_v28  ;;  %v1145_v39 = vand.u32 2147483647, %v3856_v61  ;;  %2166 = vpow2.f32 %v1935_v15  ;;  %v1684_v40 = vmul.f32 %v1464_v30, %v1264_v32  ;;  %v1247_v18 = vld [vmem:[%s4627_s1 + $0x120] sm:$0xff]  ;;  %v1248_v47 = vld [vmem:[%s4627_s1 + $0x128] sm:$0xff] }
  0xf0   :  { %v3923_v14 = vpop.eup %2162  ;;  %v1154_v19 = vmul.f32 %v3877_v55, %v1153_v20  ;;  %1779 = vst.msk [vmem:[%s4628_s2 + $0xd8] sm:$0xff] %vm1752_vm4, %v1658_v53  ;;  %v1147_v44 = vand.u32 2147483648, %v3856_v61  ;;  %2168 = vpow2.f32 %v1934_v25  ;;  %v1663_v37 = vmul.f32 %v1414_v23, %v1243_v33  ;;  %v1479_v1 = vpop.permute.xlu2 %1478  ;;  %v1255_v28 = vld [vmem:[%s4627_s1 + $0x160] sm:$0xff] }
  0xf1   :  { %v1137_v38 = vmul.f32 %v3923_v14, %v3856_v61  ;;  %1776 = vst [vmem:[%s4628_s2 + $0xc0] sm:$0xff] %v1655_v22  ;;  %v2165_v26 = vpop.eup %2164  ;;  %vm1142_vm2 = vweird.f32 %v3923_v14  ;;  %2170 = vpow2.f32 %v1933_v31  ;;  %v1664_v48 = vmul.f32 %v1414_v23, %v1244_v3  ;;  %v1275_v22 = vld [vmem:[%s4627_s1 + $0x200] sm:$0xff]  ;;  %v1256_v31 = vld [vmem:[%s4627_s1 + $0x168] sm:$0xff] }
  0xf2   :  { %v1155_v43 = vadd.f32 %v3877_v55, %v1154_v19  ;;  %1777 = vst.msk [vmem:[%s4628_s2 + $0xc8] sm:$0xff] %vm1752_vm4, %v1656_v50  ;;  %v3973_v52 = vadd.f32 1.0, %v2165_v26  ;;  %v1661_v42 = vmul.f32 %v1409_v17, %v1241_v16  ;;  %v1662_v58 = vmul.f32 %v1409_v17, %v1242_v45  ;;  %vm3990_vm3 = vmor %vm1141_vm15, %vm1142_vm2  ;;  %v1429_v0 = vpop.permute.xlu1 %1428  ;;  %v1276_v50 = vld [vmem:[%s4627_s1 + $0x208] sm:$0xff]  ;;  %v1293_v26 = vld [vmem:[%s4627_s1 + $0x290] sm:$0xff] }
  0xf3   :  { %v1138_v46 = vsub.f32 1.0, %v1137_v38  ;;  %1804 = vst [vmem:[%s4628_s2 + $0x1a0] sm:$0xff] %v1683_v24  ;;  %v1148_v60 = vor.u32 1.1754944e-38, %v1147_v44  ;;  %vm4005_vm11 = vcmp.eq.f32.partialorder %v1145_v39, 8.507059e+37  ;;  %v1690_v9 = vmul.f32 %v1479_v1, %v1270_v27 }
  0xf4   :  { %v1159_v51 = vsel %vm3943_vm1, %v3877_v55, %v1155_v43  ;;  %1805 = vst.msk [vmem:[%s4628_s2 + $0x1a8] sm:$0xff] %vm1752_vm4, %v1684_v40  ;;  %2172 = vrcp.f32 %v3973_v52  ;;  %v1130_v29 = vand.u32 2147483647, %v3973_v52  ;;  %v1132_v5 = vand.u32 2147483648, %v3973_v52 }
  0xf5   :  { %v1164_v54 = vsel %vm3897_vm13, %v1163_v11, %v1159_v51  ;;  %v1139_v41 = vmul.f32 %v3923_v14, %v1138_v46  ;;  %1784 = vst [vmem:[%s4628_s2 + $0x100] sm:$0xff] %v1663_v37  ;;  %v2167_v61 = vpop.eup %2166  ;;  %v1689_v55 = vmul.f32 %v1479_v1, %v1269_v56  ;;  %v1669_v11 = vmul.f32 %v1429_v0, %v1249_v35  ;;  %v1439_v38 = vpop.permute.xlu0 %1438  ;;  %v1254_v37 = vld [vmem:[%s4627_s1 + $0x158] sm:$0xff]  ;;  %v1261_v1 = vld [vmem:[%s4627_s1 + $0x190] sm:$0xff] }
  0xf6   :  { %1613 = vperm.xlu2 %1939, %v1164_v54   ;;  %1785 = vst.msk [vmem:[%s4628_s2 + $0x108] sm:$0xff] %vm1752_vm4, %v1664_v48  ;;  %v2169_v57 = vpop.eup %2168  ;;  %v4015_v4 = vadd.f32 1.0, %v2167_v61  ;;  %v1670_v12 = vmul.f32 %v1429_v0, %v1250_v10  ;;  %vm1126_vm0 = vweird.f32 %v3973_v52  ;;  %vm4059_vm7 = vcmp.eq.f32.partialorder %v1130_v29, 8.507059e+37 }
  0xf7   :  { %v1140_v63 = vadd.f32 %v3923_v14, %v1139_v41  ;;  %1782 = vst [vmem:[%s4628_s2 + $0xf0] sm:$0xff] %v1661_v42  ;;  %v2171_v7 = vpop.eup %2170  ;;  %v4023_v8 = vadd.f32 1.0, %v2169_v57  ;;  %v1133_v53 = vor.u32 1.1754944e-38, %v1132_v5  ;;  %v1667_v23 = vmul.f32 %v1424_v6, %v1247_v18  ;;  %v1260_v18 = vld [vmem:[%s4627_s1 + $0x188] sm:$0xff] }
  0xf8   :  { %1783 = vst.msk [vmem:[%s4628_s2 + $0xf8] sm:$0xff] %vm1752_vm4, %v1662_v58  ;;  %2174 = vrcp.f32 %v4015_v4  ;;  %v4045_v13 = vadd.f32 1.0, %v2171_v7  ;;  %vm1201_vm14 = vweird.f32 %v4015_v4  ;;  %v1205_v15 = vand.u32 2147483647, %v4015_v4  ;;  %v1494_v19 = vpop.permute.xlu2 %1493 }
  0xf9   :  { %v1144_v36 = vsel %vm3990_vm3, %v3923_v14, %v1140_v63  ;;  %1810 = vst [vmem:[%s4628_s2 + $0x1d0] sm:$0xff] %v1689_v55  ;;  %2176 = vrcp.f32 %v4023_v8  ;;  %v1207_v25 = vand.u32 2147483648, %v4015_v4  ;;  %v1668_v14 = vmul.f32 %v1424_v6, %v1248_v47  ;;  %v1281_v63 = vld [vmem:[%s4627_s1 + $0x230] sm:$0xff]  ;;  %v1262_v55 = vld [vmem:[%s4627_s1 + $0x198] sm:$0xff] }
  0xfa   :  { %v1149_v21 = vsel %vm4005_vm11, %v1148_v60, %v1144_v36  ;;  %1811 = vst.msk [vmem:[%s4628_s2 + $0x1d8] sm:$0xff] %vm1752_vm4, %v1690_v9  ;;  %v4043_v2 = vpop.eup %2172  ;;  %2178 = vrcp.f32 %v4045_v13  ;;  %v1444_v32 = vpop.permute.xlu1 %1443  ;;  %vm1186_vm8 = vweird.f32 %v4023_v8  ;;  %v1190_v33 = vand.u32 2147483647, %v4023_v8 }
  0xfb   :  { %1608 = vperm.xlu1 %1938, %v1149_v21   ;;  %1790 = vst [vmem:[%s4628_s2 + $0x130] sm:$0xff] %v1669_v11  ;;  %v1122_v49 = vmul.f32 %v4043_v2, %v3973_v52  ;;  %vm1127_vm5 = vweird.f32 %v4043_v2  ;;  %v1695_v3 = vmul.f32 %v1494_v19, %v1275_v22  ;;  %v1696_v17 = vmul.f32 %v1494_v19, %v1276_v50  ;;  %v1259_v11 = vld [vmem:[%s4627_s1 + $0x180] sm:$0xff] }
  0xfc   :  { %1791 = vst.msk [vmem:[%s4628_s2 + $0x138] sm:$0xff] %vm1752_vm4, %v1670_v12  ;;  %v1192_v43 = vand.u32 2147483648, %v4023_v8  ;;  %v1675_v44 = vmul.f32 %v1444_v32, %v1255_v28  ;;  %vm4107_vm10 = vmor %vm1126_vm0, %vm1127_vm5  ;;  %vm4111_vm9 = vcmp.eq.f32.partialorder %v1205_v15, 8.507059e+37  ;;  %v1208_v46 = vor.u32 1.1754944e-38, %v1207_v25  ;;  %v1287_v19 = vld [vmem:[%s4627_s1 + $0x260] sm:$0xff] }
  0xfd   :  { %v1123_v30 = vsub.f32 1.0, %v1122_v49  ;;  %1788 = vst [vmem:[%s4628_s2 + $0x120] sm:$0xff] %v1667_v23  ;;  %v1676_v51 = vmul.f32 %v1444_v32, %v1256_v31  ;;  %v1673_v54 = vmul.f32 %v1439_v38, %v1253_v34  ;;  %vm4127_vm6 = vcmp.eq.f32.partialorder %v1190_v33, 8.507059e+37  ;;  %v1454_v47 = vpop.permute.xlu0 %1453  ;;  %v1288_v31 = vld [vmem:[%s4627_s1 + $0x268] sm:$0xff]  ;;  %v1267_v32 = vld [vmem:[%s4627_s1 + $0x1c0] sm:$0xff]  ;;  %v1265_v34 = vld [vmem:[%s4627_s1 + $0x1b0] sm:$0xff] }
  0xfe   :  { %v4084_v24 = vpop.eup %2174  ;;  %1789 = vst.msk [vmem:[%s4628_s2 + $0x128] sm:$0xff] %vm1752_vm4, %v1668_v14  ;;  %v1674_v59 = vmul.f32 %v1439_v38, %v1254_v37  ;;  %v1193_v35 = vor.u32 1.1754944e-38, %v1192_v43  ;;  %vm1171_vm1 = vweird.f32 %v4045_v13  ;;  %v1177_v5 = vand.u32 2147483648, %v4045_v13  ;;  %v1268_v33 = vld [vmem:[%s4627_s1 + $0x1c8] sm:$0xff] }
  0xff   :  { %v4091_v39 = vpop.eup %2176  ;;  %v1124_v40 = vmul.f32 %v4043_v2, %v1123_v30  ;;  %v1197_v16 = vmul.f32 %v4084_v24, %v4015_v4  ;;  %vm1202_vm12 = vweird.f32 %v4084_v24  ;;  %1816 = vst [vmem:[%s4628_s2 + $0x200] sm:$0xff] %v1695_v3  ;;  %v1175_v36 = vand.u32 2147483647, %v4045_v13 }
 0x100   :  { %v1182_v48 = vmul.f32 %v4091_v39, %v4023_v8  ;;  %v2179_v41 = vpop.eup %2178  ;;  %vm1187_vm13 = vweird.f32 %v4091_v39  ;;  %1817 = vst.msk [vmem:[%s4628_s2 + $0x208] sm:$0xff] %vm1752_vm4, %v1696_v17  ;;  %vm4158_vm15 = vmor %vm1201_vm14, %vm1202_vm12  ;;  %v1509_v9 = vpop.permute.xlu2 %1508  ;;  %v1178_v25 = vor.u32 1.1754944e-38, %v1177_v5  ;;  %v1679_v28 = vmul.f32 %v1454_v47, %v1259_v11  ;;  %v1277_v5 = vld [vmem:[%s4627_s1 + $0x210] sm:$0xff] }
 0x101   :  { %v1125_v52 = vadd.f32 %v4043_v2, %v1124_v40  ;;  %v1198_v42 = vsub.f32 1.0, %v1197_v16  ;;  %v1167_v61 = vmul.f32 %v2179_v41, %v4045_v13  ;;  %1796 = vst [vmem:[%s4628_s2 + $0x160] sm:$0xff] %v1675_v44  ;;  %vm4177_vm2 = vmor %vm1186_vm8, %vm1187_vm13  ;;  %vm1172_vm3 = vweird.f32 %v2179_v41  ;;  %v1266_v16 = vld [vmem:[%s4627_s1 + $0x1b8] sm:$0xff] }
 0x102   :  { %v1183_v58 = vsub.f32 1.0, %v1182_v48  ;;  %1797 = vst.msk [vmem:[%s4628_s2 + $0x168] sm:$0xff] %vm1752_vm4, %v1676_v51  ;;  %v1459_v10 = vpop.permute.xlu1 %1458  ;;  %v1701_v21 = vmul.f32 %v1509_v9, %v1281_v63  ;;  %vm4207_vm11 = vmor %vm1171_vm1, %vm1172_vm3  ;;  %vm1176_vm0 = vcmp.eq.f32.partialorder %v1175_v36, 8.507059e+37  ;;  %v1680_v13 = vmul.f32 %v1454_v47, %v1260_v18  ;;  %v1273_v48 = vld [vmem:[%s4627_s1 + $0x1f0] sm:$0xff]  ;;  %v1274_v51 = vld [vmem:[%s4627_s1 + $0x1f8] sm:$0xff] }
 0x103   :  { %v1129_v60 = vsel %vm4107_vm10, %v4043_v2, %v1125_v52  ;;  %v1199_v27 = vmul.f32 %v4084_v24, %v1198_v42  ;;  %v1168_v7 = vsub.f32 1.0, %v1167_v61  ;;  %1794 = vst [vmem:[%s4628_s2 + $0x150] sm:$0xff] %v1673_v54  ;;  %v1702_v2 = vmul.f32 %v1509_v9, %v1282_v62  ;;  %v1271_v54 = vld [vmem:[%s4627_s1 + $0x1e0] sm:$0xff]  ;;  %v1300_v62 = vld [vmem:[%s4627_s1 + $0x2c8] sm:$0xff] }
 0x104   :  { %v1134_v0 = vsel %vm4059_vm7, %v1133_v53, %v1129_v60  ;;  %v1184_v29 = vmul.f32 %v4091_v39, %v1183_v58  ;;  %1795 = vst.msk [vmem:[%s4628_s2 + $0x158] sm:$0xff] %vm1752_vm4, %v1674_v59  ;;  %v1681_v12 = vmul.f32 %v1459_v10, %v1261_v1  ;;  %v1682_v53 = vmul.f32 %v1459_v10, %v1262_v55  ;;  %v1272_v59 = vld [vmem:[%s4627_s1 + $0x1e8] sm:$0xff]  ;;  %v1299_v63 = vld [vmem:[%s4627_s1 + $0x2c0] sm:$0xff] }
 0x105   :  { %1603 = vperm.xlu0 %1937, %v1134_v0   ;;  %v1200_v4 = vadd.f32 %v4084_v24, %v1199_v27  ;;  %v1169_v20 = vmul.f32 %v2179_v41, %v1168_v7  ;;  %1822 = vst [vmem:[%s4628_s2 + $0x230] sm:$0xff] %v1701_v21  ;;  %v1469_v43 = vpop.permute.xlu0 %1468  ;;  %v1279_v1 = vld [vmem:[%s4627_s1 + $0x220] sm:$0xff]  ;;  %v1280_v0 = vld [vmem:[%s4627_s1 + $0x228] sm:$0xff]  ;;  %v1278_v7 = vld [vmem:[%s4627_s1 + $0x218] sm:$0xff] }
 0x106   :  { %v1185_v8 = vadd.f32 %v4091_v39, %v1184_v29  ;;  %1823 = vst.msk [vmem:[%s4628_s2 + $0x238] sm:$0xff] %vm1752_vm4, %v1702_v2  ;;  %v1685_v37 = vmul.f32 %v1469_v43, %v1265_v34  ;;  %v1686_v45 = vmul.f32 %v1469_v43, %v1266_v16  ;;  %v1306_v21 = vld [vmem:[%s4627_s1 + $0x2f8] sm:$0xff]  ;;  %v1285_v2 = vld [vmem:[%s4627_s1 + $0x250] sm:$0xff]  ;;  %v1311_v16 = vld [vmem:[%s4627_s1 + $0x320] sm:$0xff] }
 0x107   :  { %v1204_v49 = vsel %vm4158_vm15, %v4084_v24, %v1200_v4  ;;  %v1170_v23 = vadd.f32 %v2179_v41, %v1169_v20  ;;  %1802 = vst [vmem:[%s4628_s2 + $0x190] sm:$0xff] %v1681_v12  ;;  %v1286_v12 = vld [vmem:[%s4627_s1 + $0x258] sm:$0xff]  ;;  %v1297_v34 = vld [vmem:[%s4627_s1 + $0x2b0] sm:$0xff]  ;;  %v1312_v43 = vld [vmem:[%s4627_s1 + $0x328] sm:$0xff] }
 0x108   :  { %v1209_v22 = vsel %vm4111_vm9, %v1208_v46, %v1204_v49  ;;  %v1189_v50 = vsel %vm4177_vm2, %v4091_v39, %v1185_v8  ;;  %1803 = vst.msk [vmem:[%s4628_s2 + $0x198] sm:$0xff] %vm1752_vm4, %v1682_v53  ;;  %v1524_v3 = vpop.permute.xlu2 %1523  ;;  %v1294_v46 = vld [vmem:[%s4627_s1 + $0x298] sm:$0xff]  ;;  %v1305_v8 = vld [vmem:[%s4627_s1 + $0x2f0] sm:$0xff]  ;;  %v1283_v49 = vld [vmem:[%s4627_s1 + $0x240] sm:$0xff] }
 0x109   :  { %1628 = vperm.xlu2 %1939, %v1209_v22   ;;  %v1194_v30 = vsel %vm4127_vm6, %v1193_v35, %v1189_v50  ;;  %v1174_v14 = vsel %vm4207_vm11, %v2179_v41, %v1170_v23  ;;  %1800 = vst [vmem:[%s4628_s2 + $0x180] sm:$0xff] %v1679_v28  ;;  %v1707_v38 = vmul.f32 %v1524_v3, %v1287_v19  ;;  %v1284_v50 = vld [vmem:[%s4627_s1 + $0x248] sm:$0xff]  ;;  %v1291_v23 = vld [vmem:[%s4627_s1 + $0x280] sm:$0xff]  ;;  %v1290_v19 = vld [vmem:[%s4627_s1 + $0x278] sm:$0xff] }
 0x10a   :  { %1623 = vperm.xlu1 %1938, %v1194_v30   ;;  %v1179_v24 = vsel %vm1176_vm0, %v1178_v25, %v1174_v14  ;;  %1801 = vst.msk [vmem:[%s4628_s2 + $0x188] sm:$0xff] %vm1752_vm4, %v1680_v13  ;;  %v1474_v17 = vpop.permute.xlu1 %1473  ;;  %v1708_v39 = vmul.f32 %v1524_v3, %v1288_v31  ;;  %v1292_v13 = vld [vmem:[%s4627_s1 + $0x288] sm:$0xff]  ;;  %v1289_v14 = vld [vmem:[%s4627_s1 + $0x270] sm:$0xff] }
 0x10b   :  { %v1687_v40 = vmul.f32 %v1474_v17, %v1267_v32  ;;  %v1688_v44 = vmul.f32 %v1474_v17, %v1268_v33  ;;  %1828 = vst [vmem:[%s4628_s2 + $0x260] sm:$0xff] %v1707_v38  ;;  %v1298_v38 = vld [vmem:[%s4627_s1 + $0x2b8] sm:$0xff] }
 0x10c   :  { %1829 = vst.msk [vmem:[%s4628_s2 + $0x268] sm:$0xff] %vm1752_vm4, %v1708_v39  ;;  %v1295_v39 = vld [vmem:[%s4627_s1 + $0x2a0] sm:$0xff] }
 0x10d   :  { %1618 = vperm.xlu0 %1937, %v1179_v24   ;;  %1808 = vst [vmem:[%s4628_s2 + $0x1c0] sm:$0xff] %v1687_v40  ;;  %v1484_v60 = vpop.permute.xlu0 %1483 }
 0x10e   :  { %1809 = vst.msk [vmem:[%s4628_s2 + $0x1c8] sm:$0xff] %vm1752_vm4, %v1688_v44  ;;  %v1691_v35 = vmul.f32 %v1484_v60, %v1271_v54  ;;  %v1692_v61 = vmul.f32 %v1484_v60, %v1272_v59  ;;  %v1303_v54 = vld [vmem:[%s4627_s1 + $0x2e0] sm:$0xff]  ;;  %v1317_v59 = vld [vmem:[%s4627_s1 + $0x350] sm:$0xff]  ;;  %v1318_v60 = vld [vmem:[%s4627_s1 + $0x358] sm:$0xff] }
 0x10f   :  { %1806 = vst [vmem:[%s4628_s2 + $0x1b0] sm:$0xff] %v1685_v37 }
 0x110   :  { %1807 = vst.msk [vmem:[%s4628_s2 + $0x1b8] sm:$0xff] %vm1752_vm4, %v1686_v45  ;;  %v1539_v52 = vpop.permute.xlu2 %1538  ;;  %v1296_v45 = vld [vmem:[%s4627_s1 + $0x2a8] sm:$0xff] }
 0x111   :  { %v1713_v41 = vmul.f32 %v1539_v52, %v1293_v26  ;;  %v1714_v58 = vmul.f32 %v1539_v52, %v1294_v46  ;;  %1812 = vst [vmem:[%s4628_s2 + $0x1e0] sm:$0xff] %v1691_v35 }
 0x112   :  { %v1489_v42 = vpop.permute.xlu1 %1488  ;;  %1813 = vst.msk [vmem:[%s4628_s2 + $0x1e8] sm:$0xff] %vm1752_vm4, %v1692_v61  ;;  %v1302_v61 = vld [vmem:[%s4627_s1 + $0x2d8] sm:$0xff] }
 0x113   :  { %v1693_v56 = vmul.f32 %v1489_v42, %v1273_v48  ;;  %v1694_v27 = vmul.f32 %v1489_v42, %v1274_v51  ;;  %1834 = vst [vmem:[%s4628_s2 + $0x290] sm:$0xff] %v1713_v41  ;;  %v1304_v41 = vld [vmem:[%s4627_s1 + $0x2e8] sm:$0xff] }
 0x114   :  { %1835 = vst.msk [vmem:[%s4628_s2 + $0x298] sm:$0xff] %vm1752_vm4, %v1714_v58 }
 0x115   :  { %1814 = vst [vmem:[%s4628_s2 + $0x1f0] sm:$0xff] %v1693_v56  ;;  %v1301_v56 = vld [vmem:[%s4627_s1 + $0x2d0] sm:$0xff] }
 0x116   :  { %1815 = vst.msk [vmem:[%s4628_s2 + $0x1f8] sm:$0xff] %vm1752_vm4, %v1694_v27 }
 0x119   :  { %v1499_v36 = vpop.permute.xlu0 %1498 }
 0x11a   :  { %v1504_v29 = vpop.permute.xlu1 %1503  ;;  %v1697_v10 = vmul.f32 %v1499_v36, %v1277_v5  ;;  %v1698_v11 = vmul.f32 %v1499_v36, %v1278_v7  ;;  %v1323_v5 = vld [vmem:[%s4627_s1 + $0x380] sm:$0xff]  ;;  %v1309_v36 = vld [vmem:[%s4627_s1 + $0x310] sm:$0xff] }
 0x11b   :  { %v1699_v6 = vmul.f32 %v1504_v29, %v1279_v1  ;;  %v1700_v9 = vmul.f32 %v1504_v29, %v1280_v0 }
 0x11c   :  { %1818 = vst [vmem:[%s4628_s2 + $0x210] sm:$0xff] %v1697_v10  ;;  %v1307_v10 = vld [vmem:[%s4627_s1 + $0x300] sm:$0xff] }
 0x11d   :  { %1820 = vst [vmem:[%s4628_s2 + $0x220] sm:$0xff] %v1699_v6 }
 0x11e   :  { %1821 = vst.msk [vmem:[%s4628_s2 + $0x228] sm:$0xff] %vm1752_vm4, %v1700_v9  ;;  %v1310_v9 = vld [vmem:[%s4627_s1 + $0x318] sm:$0xff] }
 0x11f   :  { %v1554_v57 = vpop.permute.xlu2 %1553  ;;  %1819 = vst.msk [vmem:[%s4628_s2 + $0x218] sm:$0xff] %vm1752_vm4, %v1698_v11  ;;  %v1308_v11 = vld [vmem:[%s4627_s1 + $0x308] sm:$0xff] }
 0x120   :  { %v1719_v55 = vmul.f32 %v1554_v57, %v1299_v63  ;;  %v1720_v4 = vmul.f32 %v1554_v57, %v1300_v62 }
 0x121   :  { %v1514_v15 = vpop.permute.xlu0 %1513 }
 0x122   :  { %1840 = vst [vmem:[%s4628_s2 + $0x2c0] sm:$0xff] %v1719_v55  ;;  %v1519_v47 = vpop.permute.xlu1 %1518  ;;  %v1703_v28 = vmul.f32 %v1514_v15, %v1283_v49  ;;  %v1704_v30 = vmul.f32 %v1514_v15, %v1284_v50  ;;  %v1324_v55 = vld [vmem:[%s4627_s1 + $0x388] sm:$0xff]  ;;  %v1315_v49 = vld [vmem:[%s4627_s1 + $0x340] sm:$0xff] }
 0x123   :  { %1841 = vst.msk [vmem:[%s4628_s2 + $0x2c8] sm:$0xff] %vm1752_vm4, %v1720_v4  ;;  %v1705_v22 = vmul.f32 %v1519_v47, %v1285_v2  ;;  %v1706_v25 = vmul.f32 %v1519_v47, %v1286_v12 }
 0x124   :  { %1824 = vst [vmem:[%s4628_s2 + $0x240] sm:$0xff] %v1703_v28 }
 0x125   :  { %1826 = vst [vmem:[%s4628_s2 + $0x250] sm:$0xff] %v1705_v22  ;;  %v1314_v22 = vld [vmem:[%s4627_s1 + $0x338] sm:$0xff] }
 0x126   :  { %1827 = vst.msk [vmem:[%s4628_s2 + $0x258] sm:$0xff] %vm1752_vm4, %v1706_v25 }
 0x127   :  { %v1569_v18 = vpop.permute.xlu2 %1568  ;;  %1825 = vst.msk [vmem:[%s4628_s2 + $0x248] sm:$0xff] %vm1752_vm4, %v1704_v30  ;;  %v1329_v30 = vld [vmem:[%s4627_s1 + $0x3b0] sm:$0xff] }
 0x128   :  { %v1725_v20 = vmul.f32 %v1569_v18, %v1305_v8  ;;  %v1726_v53 = vmul.f32 %v1569_v18, %v1306_v21 }
 0x12a   :  { %1846 = vst [vmem:[%s4628_s2 + $0x2f0] sm:$0xff] %v1725_v20  ;;  %v1534_v31 = vpop.permute.xlu1 %1533  ;;  %v1316_v20 = vld [vmem:[%s4627_s1 + $0x348] sm:$0xff] }
 0x12b   :  { %1847 = vst.msk [vmem:[%s4628_s2 + $0x2f8] sm:$0xff] %vm1752_vm4, %v1726_v53  ;;  %v1711_v32 = vmul.f32 %v1534_v31, %v1291_v23  ;;  %v1712_v24 = vmul.f32 %v1534_v31, %v1292_v13  ;;  %v1313_v53 = vld [vmem:[%s4627_s1 + $0x330] sm:$0xff]  ;;  %v1330_v23 = vld [vmem:[%s4627_s1 + $0x3b8] sm:$0xff] }
 0x12d   :  { %1832 = vst [vmem:[%s4628_s2 + $0x280] sm:$0xff] %v1711_v32 }
 0x12e   :  { %1833 = vst.msk [vmem:[%s4628_s2 + $0x288] sm:$0xff] %vm1752_vm4, %v1712_v24  ;;  %v1321_v24 = vld [vmem:[%s4627_s1 + $0x370] sm:$0xff] }
 0x130   :  { %v1529_v33 = vpop.permute.xlu0 %1528 }
 0x131   :  { %v1709_v3 = vmul.f32 %v1529_v33, %v1289_v14  ;;  %v1710_v17 = vmul.f32 %v1529_v33, %v1290_v19  ;;  %v1322_v33 = vld [vmem:[%s4627_s1 + $0x378] sm:$0xff] }
 0x133   :  { %1830 = vst [vmem:[%s4628_s2 + $0x270] sm:$0xff] %v1709_v3 }
 0x134   :  { %1831 = vst.msk [vmem:[%s4628_s2 + $0x278] sm:$0xff] %vm1752_vm4, %v1710_v17 }
 0x13b   :  { %v1549_v40 = vpop.permute.xlu1 %1548 }
 0x13c   :  { %v1717_v44 = vmul.f32 %v1549_v40, %v1297_v34  ;;  %v1718_v37 = vmul.f32 %v1549_v40, %v1298_v38  ;;  %v1544_v26 = vpop.permute.xlu0 %1543  ;;  %v1319_v38 = vld [vmem:[%s4627_s1 + $0x360] sm:$0xff] }
 0x13d   :  { %v1715_v46 = vmul.f32 %v1544_v26, %v1295_v39  ;;  %v1716_v42 = vmul.f32 %v1544_v26, %v1296_v45  ;;  %v1320_v39 = vld [vmem:[%s4627_s1 + $0x368] sm:$0xff] }
 0x13e   :  { %v1584_v48 = vpop.permute.xlu2 %1583  ;;  %1838 = vst [vmem:[%s4628_s2 + $0x2b0] sm:$0xff] %v1717_v44  ;;  %v1327_v44 = vld [vmem:[%s4627_s1 + $0x3a0] sm:$0xff] }
 0x13f   :  { %v1731_v51 = vmul.f32 %v1584_v48, %v1311_v16  ;;  %v1732_v52 = vmul.f32 %v1584_v48, %v1312_v43  ;;  %1839 = vst.msk [vmem:[%s4628_s2 + $0x2b8] sm:$0xff] %vm1752_vm4, %v1718_v37  ;;  %v1328_v37 = vld [vmem:[%s4627_s1 + $0x3a8] sm:$0xff]  ;;  %v1325_v48 = vld [vmem:[%s4627_s1 + $0x390] sm:$0xff] }
 0x140   :  { %1836 = vst [vmem:[%s4628_s2 + $0x2a0] sm:$0xff] %v1715_v46 }
 0x141   :  { %1852 = vst [vmem:[%s4628_s2 + $0x320] sm:$0xff] %v1731_v51  ;;  %v1326_v51 = vld [vmem:[%s4627_s1 + $0x398] sm:$0xff] }
 0x142   :  { %1853 = vst.msk [vmem:[%s4628_s2 + $0x328] sm:$0xff] %vm1752_vm4, %v1732_v52 }
 0x143   :  { %1837 = vst.msk [vmem:[%s4628_s2 + $0x2a8] sm:$0xff] %vm1752_vm4, %v1716_v42  ;;  %v1564_v58 = vpop.permute.xlu1 %1563 }
 0x144   :  { %v1723_v27 = vmul.f32 %v1564_v58, %v1303_v54  ;;  %v1724_v35 = vmul.f32 %v1564_v58, %v1304_v41 }
 0x145   :  { %v1559_v63 = vpop.permute.xlu0 %1558 }
 0x146   :  { %v1599_v62 = vpop.permute.xlu2 %1598  ;;  %1844 = vst [vmem:[%s4628_s2 + $0x2e0] sm:$0xff] %v1723_v27  ;;  %v1721_v1 = vmul.f32 %v1559_v63, %v1301_v56  ;;  %v1722_v29 = vmul.f32 %v1559_v63, %v1302_v61 }
 0x147   :  { %v1737_v0 = vmul.f32 %v1599_v62, %v1317_v59  ;;  %v1738_v57 = vmul.f32 %v1599_v62, %v1318_v60  ;;  %1845 = vst.msk [vmem:[%s4628_s2 + $0x2e8] sm:$0xff] %vm1752_vm4, %v1724_v35 }
 0x148   :  { %1842 = vst [vmem:[%s4628_s2 + $0x2d0] sm:$0xff] %v1721_v1 }
 0x149   :  { %1858 = vst [vmem:[%s4628_s2 + $0x350] sm:$0xff] %v1737_v0 }
 0x14a   :  { %1859 = vst.msk [vmem:[%s4628_s2 + $0x358] sm:$0xff] %vm1752_vm4, %v1738_v57 }
 0x14b   :  { %1843 = vst.msk [vmem:[%s4628_s2 + $0x2d8] sm:$0xff] %vm1752_vm4, %v1722_v29 }
 0x150   :  { %v1614_v4 = vpop.permute.xlu2 %1613 }
 0x151   :  { %v1743_v6 = vmul.f32 %v1614_v4, %v1323_v5  ;;  %v1744_v7 = vmul.f32 %v1614_v4, %v1324_v55 }
 0x153   :  { %1864 = vst [vmem:[%s4628_s2 + $0x380] sm:$0xff] %v1743_v6 }
 0x154   :  { %1865 = vst.msk [vmem:[%s4628_s2 + $0x388] sm:$0xff] %vm1752_vm4, %v1744_v7 }
 0x158   :  { %v1579_v8 = vpop.permute.xlu1 %1578 }
 0x159   :  { %v1729_v21 = vmul.f32 %v1579_v8, %v1309_v36  ;;  %v1730_v2 = vmul.f32 %v1579_v8, %v1310_v9  ;;  %v1574_v12 = vpop.permute.xlu0 %1573 }
 0x15a   :  { %v1727_v18 = vmul.f32 %v1574_v12, %v1307_v10  ;;  %v1728_v47 = vmul.f32 %v1574_v12, %v1308_v11 }
 0x15b   :  { %1850 = vst [vmem:[%s4628_s2 + $0x310] sm:$0xff] %v1729_v21 }
 0x15c   :  { %1851 = vst.msk [vmem:[%s4628_s2 + $0x318] sm:$0xff] %vm1752_vm4, %v1730_v2 }
 0x15d   :  { %1848 = vst [vmem:[%s4628_s2 + $0x300] sm:$0xff] %v1727_v18 }
 0x15e   :  { %1849 = vst.msk [vmem:[%s4628_s2 + $0x308] sm:$0xff] %vm1752_vm4, %v1728_v47 }
 0x160   :  { %v1594_v50 = vpop.permute.xlu1 %1593 }
 0x161   :  { %v1735_v15 = vmul.f32 %v1594_v50, %v1315_v49  ;;  %v1736_v25 = vmul.f32 %v1594_v50, %v1316_v20  ;;  %v1589_v28 = vpop.permute.xlu0 %1588 }
 0x162   :  { %v1733_v13 = vmul.f32 %v1589_v28, %v1313_v53  ;;  %v1734_v14 = vmul.f32 %v1589_v28, %v1314_v22 }
 0x163   :  { %1856 = vst [vmem:[%s4628_s2 + $0x340] sm:$0xff] %v1735_v15  ;;  %v1629_v19 = vpop.permute.xlu2 %1628 }
 0x164   :  { %1857 = vst.msk [vmem:[%s4628_s2 + $0x348] sm:$0xff] %vm1752_vm4, %v1736_v25  ;;  %v1749_v31 = vmul.f32 %v1629_v19, %v1329_v30  ;;  %v1750_v32 = vmul.f32 %v1629_v19, %v1330_v23 }
 0x165   :  { %1854 = vst [vmem:[%s4628_s2 + $0x330] sm:$0xff] %v1733_v13 }
 0x166   :  { %1855 = vst.msk [vmem:[%s4628_s2 + $0x338] sm:$0xff] %vm1752_vm4, %v1734_v14 }
 0x167   :  { %1870 = vst [vmem:[%s4628_s2 + $0x3b0] sm:$0xff] %v1749_v31 }
 0x168   :  { %1871 = vst.msk [vmem:[%s4628_s2 + $0x3b8] sm:$0xff] %vm1752_vm4, %v1750_v32 }
 0x16d   :  { %v1609_v3 = vpop.permute.xlu1 %1608 }
 0x16e   :  { %v1741_v17 = vmul.f32 %v1609_v3, %v1321_v24  ;;  %v1742_v34 = vmul.f32 %v1609_v3, %v1322_v33 }
 0x170   :  { %1862 = vst [vmem:[%s4628_s2 + $0x370] sm:$0xff] %v1741_v17 }
 0x171   :  { %1863 = vst.msk [vmem:[%s4628_s2 + $0x378] sm:$0xff] %vm1752_vm4, %v1742_v34 }
 0x177   :  { %v1604_v40 = vpop.permute.xlu0 %1603 }
 0x178   :  { %v1739_v16 = vmul.f32 %v1604_v40, %v1319_v38  ;;  %v1740_v43 = vmul.f32 %v1604_v40, %v1320_v39 }
 0x17a   :  { %1860 = vst [vmem:[%s4628_s2 + $0x360] sm:$0xff] %v1739_v16 }
 0x17b   :  { %1861 = vst.msk [vmem:[%s4628_s2 + $0x368] sm:$0xff] %vm1752_vm4, %v1740_v43 }
 0x17c   :  { %v1624_v45 = vpop.permute.xlu1 %1623 }
 0x17d   :  { %v1747_v26 = vmul.f32 %v1624_v45, %v1327_v44  ;;  %v1748_v46 = vmul.f32 %v1624_v45, %v1328_v37 }
 0x17f   :  { %1868 = vst [vmem:[%s4628_s2 + $0x3a0] sm:$0xff] %v1747_v26  ;;  %v1619_v52 = vpop.permute.xlu0 %1618 }
 0x180   :  { %1869 = vst.msk [vmem:[%s4628_s2 + $0x3a8] sm:$0xff] %vm1752_vm4, %v1748_v46  ;;  %v1745_v42 = vmul.f32 %v1619_v52, %v1325_v48  ;;  %v1746_v54 = vmul.f32 %v1619_v52, %v1326_v51 }
 0x182   :  { %1866 = vst [vmem:[%s4628_s2 + $0x390] sm:$0xff] %v1745_v42 }
 0x183   :  { %1867 = vst.msk [vmem:[%s4628_s2 + $0x398] sm:$0xff] %vm1752_vm4, %v1746_v54 }

</bundles_post_ra>
